<compile_context>
chip_gen: v5e
topology: v5e:2x2
jax: 0.10.0
libtpu: 0.0.40
codegen_flags: <defaults>
</compile_context>

<pallas_src>
import functools
import math

import jax
import jax.numpy as jnp
from jax.experimental import pallas as pl
from jax.experimental.pallas import tpu as pltpu

_LANE = 128                # lane width: batch-tile alignment
_DEFAULT_TILE_CAP = 4096   # rows per grid step ceiling (VMEM-safe on v5e/v6e/v7x)


def _cdiv(a, b):
    return -(-a // b)


def _round_up(n, m):
    return _cdiv(n, m) * m


def _device_kind():
    try:
        return jax.devices()[0].device_kind.lower()
    except Exception:
        return ""


def _tensorcores_per_chip():
    kind = _device_kind()
    # v7x (and v4 megacore) expose 2 TensorCores per chip; "parallel" grid axes shard
    # across them. v5e / v6e are single-TC, where extra grid steps are pure overhead.
    return 2 if ("v7" in kind or "7x" in kind or "v4" in kind) else 1


def _fc1_on_vpu_default():
    kind = _device_kind()
    # The MXU push slot is the binding unit on the 256-wide MXUs (v6e / v7x); fc1's
    # K=state_dim matmul wastes ~25% of the cadence there for ~1.5% of the FLOPs.
    # Keep fc1 on the MXU for v5e / unknown chips (128-wide MXU, tighter VPU/vst budget).
    return ("v6" in kind) or ("v7" in kind) or ("7x" in kind)


def _pick_tile(batch, batch_tile, num_cores):
    """Rows per grid step: as few steps as possible (amortize ~0.35us/step), but at least
    one step per TensorCore once the batch is big enough to split, and never more steps
    than there are 128-row chunks of real data."""
    cap = max(_LANE, _round_up(int(batch_tile), _LANE))
    max_useful_steps = max(1, _cdiv(batch, _LANE))
    steps = min(max(_cdiv(batch, cap), num_cores), max_useful_steps)
    tile = max(_LANE, _round_up(_cdiv(batch, steps), _LANE))   # always <= cap
    num_tiles = _cdiv(batch, tile)
    return tile, num_tiles, num_tiles * tile


def _valuenet_kernel(x_ref,
                     w1_ref, b1_ref,
                     w2_ref, b2_ref,
                     w3_ref, b3_ref,
                     w4_ref, b4_ref,
                     w5_ref, b5_ref,
                     o_ref,
                     *, fc1_on_vpu):
    bf16 = jnp.bfloat16
    x = x_ref[...]                                    # (TB, S) f32; casts happen in-kernel

    if fc1_on_vpu:
        # fc1 as S rank-1 f32 FMA updates on the VPU: keeps the MXU free for the K=64/128
        # layers and keeps the first layer in full f32 precision.
        h1 = b1_ref[...]                              # (1, 64) -> broadcasts to (TB, 64)
        for k in range(x.shape[1]):                   # static unroll; S is small
            h1 = h1 + x[:, k:k + 1] * w1_ref[k:k + 1, :]
    else:
        h1 = jnp.dot(x.astype(bf16), w1_ref[...].astype(bf16),
                     preferred_element_type=jnp.float32) + b1_ref[...]
    h1 = jnp.maximum(h1, 0.0)

    # fc2 + relu : (TB, 64) @ (64, 128), bf16 operands, f32 MXU accumulation.
    h2 = jnp.dot(h1.astype(bf16), w2_ref[...],
                 preferred_element_type=jnp.float32) + b2_ref[...]
    h2 = jnp.maximum(h2, 0.0)

    # fc3 + relu, residual already folded into W3' = W3 + I : (TB, 128) @ (128, 128).
    h3 = jnp.dot(h2.astype(bf16), w3_ref[...],
                 preferred_element_type=jnp.float32) + b3_ref[...]
    h3 = jnp.maximum(h3, 0.0)

    # fc4 + relu : (TB, 128) @ (128, 64).
    h4 = jnp.dot(h3.astype(bf16), w4_ref[...],
                 preferred_element_type=jnp.float32) + b4_ref[...]
    h4 = jnp.maximum(h4, 0.0)

    # fc5 (64 -> 1): f32 VPU multiply + lane reduction. Output is a (TB, 1) column; total
    # writeback is only B floats and the masked column stores hide under MXU slack.
    out = jnp.sum(h4 * w5_ref[...], axis=-1, keepdims=True) + b5_ref[...]
    o_ref[...] = out.astype(o_ref.dtype)


def prepare_value_net_params(params):
    """One-time weight preparation (do NOT redo per forward call):
       - fold the fc3 residual: W3' = W3 + I (in f32, then cast to bf16),
       - bf16-cast the MXU weights; keep biases, fc1 and fc5 weights in f32,
       - reshape the fc5 weight to a (1, 64) row for the in-kernel VPU reduction."""
    (w1, b1), (w2, b2), (w3, b3), (w4, b4), (w5, b5) = (
        params["fc1"], params["fc2"], params["fc3"], params["fc4"], params["fc5"])
    w3_fold = w3.astype(jnp.float32) + jnp.eye(w3.shape[0], dtype=jnp.float32)
    return dict(
        w1=w1.astype(jnp.float32), b1=b1.astype(jnp.float32),
        w2=w2.astype(jnp.bfloat16), b2=b2.astype(jnp.float32),
        w3=w3_fold.astype(jnp.bfloat16), b3=b3.astype(jnp.float32),
        w4=w4.astype(jnp.bfloat16), b4=b4.astype(jnp.float32),
        w5=w5.reshape(1, -1).astype(jnp.float32), b5=b5.reshape(1, 1).astype(jnp.float32),
    )


def value_net_forward(x, prepared, *, batch_tile=_DEFAULT_TILE_CAP, fc1_on_vpu=None):
    """x: (B, state_dim) f32. `prepared` = prepare_value_net_params(params). Returns (B, 1) f32."""
    B, state_dim = x.shape
    if fc1_on_vpu is None:
        fc1_on_vpu = _fc1_on_vpu_default()

    tile, num_tiles, b_pad = _pick_tile(B, batch_tile, _tensorcores_per_chip())

    x = x.astype(jnp.float32)
    if b_pad != B:
        x = jnp.pad(x, ((0, b_pad - B), (0, 0)))      # padded rows are sliced off below

    w1, b1 = prepared["w1"], prepared["b1"]
    w2, b2 = prepared["w2"], prepared["b2"]
    w3, b3 = prepared["w3"], prepared["b3"]
    w4, b4 = prepared["w4"], prepared["b4"]
    w5, b5 = prepared["w5"], prepared["b5"]

    def full(a):
        # Constant index map: DMA'd once, stays VMEM-resident across all grid steps.
        return pl.BlockSpec(a.shape, lambda i: (0, 0))

    macs_per_row = state_dim * 64 + 64 * 128 + 128 * 128 + 128 * 64 + 64
    weight_bytes = sum(int(a.size) * a.dtype.itemsize
                       for a in (w1, b1, w2, b2, w3, b3, w4, b4, w5, b5))
    cost = pl.CostEstimate(
        flops=2 * b_pad * macs_per_row,
        transcendentals=0,
        bytes_accessed=b_pad * state_dim * 4 + weight_bytes + b_pad * 4,
    )

    out = pl.pallas_call(
        functools.partial(_valuenet_kernel, fc1_on_vpu=bool(fc1_on_vpu)),
        out_shape=jax.ShapeDtypeStruct((b_pad, 1), jnp.float32),
        grid=(num_tiles,),
        in_specs=[
            pl.BlockSpec((tile, state_dim), lambda i: (i, 0)),
            full(w1), full(b1),
            full(w2), full(b2),
            full(w3), full(b3),
            full(w4), full(b4),
            full(w5), full(b5),
        ],
        out_specs=pl.BlockSpec((tile, 1), lambda i: (i, 0)),
        compiler_params=pltpu.CompilerParams(
            dimension_semantics=("parallel",),
        ),
        cost_estimate=cost,
    )(x, w1, b1, w2, b2, w3, b3, w4, b4, w5, b5)

    return out[:B]


def init_value_net_params(key, state_dim):
    """Deterministic init mimicking PyTorch Linear default: U(-1/sqrt(fan_in), 1/sqrt(fan_in))."""
    dims = [(state_dim, 64), (64, 128), (128, 128), (128, 64), (64, 1)]
    names = ["fc1", "fc2", "fc3", "fc4", "fc5"]
    params = {}
    for name, (fan_in, fan_out) in zip(names, dims):
        key, kw, kb = jax.random.split(key, 3)
        bound = 1.0 / math.sqrt(fan_in)
        w = jax.random.uniform(kw, (fan_in, fan_out), jnp.float32, -bound, bound)
        b = jax.random.uniform(kb, (1, fan_out), jnp.float32, -bound, bound)
        params[name] = (w, b)
    return params


def value_net_reference(x, params, *, match_kernel=False, fc1_on_vpu=False):
    """Pure-JAX reference of the PyTorch forward pass.

    match_kernel=False: exact f32 PyTorch semantics.
    match_kernel=True : mirrors the kernel's precision and op order (bf16 matmul operands,
    f32 accumulation, residual folded into W3+I, f32 rank-1 fc1 when fc1_on_vpu)."""
    (w1, b1), (w2, b2), (w3, b3), (w4, b4), (w5, b5) = (
        params["fc1"], params["fc2"], params["fc3"], params["fc4"], params["fc5"])
    relu = lambda t: jnp.maximum(t, 0.0)

    if not match_kernel:
        mm = lambda a, w: jnp.dot(a, w, preferred_element_type=jnp.float32,
                                  precision=jax.lax.Precision.HIGHEST)
        h1 = relu(mm(x, w1) + b1)
        h2 = relu(mm(h1, w2) + b2)
        h3 = relu(mm(h2, w3) + b3 + h2)
        h4 = relu(mm(h3, w4) + b4)
        return mm(h4, w5) + b5

    bf16 = jnp.bfloat16
    mm = lambda a, w: jnp.dot(a.astype(bf16), w.astype(bf16),
                              preferred_element_type=jnp.float32)
    if fc1_on_vpu:
        h1 = b1
        for k in range(x.shape[1]):                   # same f32 accumulation order as kernel
            h1 = h1 + x[:, k:k + 1] * w1[k:k + 1, :]
    else:
        h1 = mm(x, w1) + b1
    h1 = relu(h1)
    h2 = relu(mm(h1, w2) + b2)
    w3_fold = w3 + jnp.eye(w3.shape[0], dtype=w3.dtype)
    h3 = relu(mm(h2, w3_fold) + b3)
    h4 = relu(mm(h3, w4) + b4)
    return jnp.sum(h4 * w5.reshape(1, -1), axis=-1, keepdims=True) + b5


if __name__ == "__main__":
    key = jax.random.PRNGKey(0)
    k_params, k_x = jax.random.split(key)

    state_dim = 8
    batch = 20            # deliberately not a tile multiple: exercises the padding path

    params = init_value_net_params(k_params, state_dim)
    prepared = prepare_value_net_params(params)       # one-time weight prep (not per call)
    x = jax.random.normal(k_x, (batch, state_dim), jnp.float32)

    fc1_vpu = _fc1_on_vpu_default()
    try:
        out = jax.block_until_ready(value_net_forward(x, prepared, fc1_on_vpu=fc1_vpu))
    except Exception:
        # Safety net: if the experimental VPU-fc1 path hits a Mosaic lowering corner on this
        # toolchain, fall back to the always-supported MXU fc1 (same semantics).
        fc1_vpu = False
        out = jax.block_until_ready(value_net_forward(x, prepared, fc1_on_vpu=False))

    assert out.shape == (batch, 1)

    ref_kernel_prec = value_net_reference(x, params, match_kernel=True, fc1_on_vpu=fc1_vpu)
    ref_f32 = value_net_reference(x, params)
    assert jnp.allclose(out, ref_kernel_prec, atol=1e-3, rtol=1e-3), \
        "mismatch vs kernel-precision (bf16 matmul) reference"
    assert jnp.allclose(out, ref_f32, atol=5e-2, rtol=5e-2), \
        "mismatch vs full-f32 reference"

    print("KERNEL_OK")
</pallas_src>

<mosaic_0001>
module attributes {stable_mosaic.version = 11 : i64} {
  func.func @_valuenet_kernel(%arg0: i32, %arg1: memref<128x8xf32, #tpu.memory_space<vmem>>, %arg2: memref<8x64xf32, #tpu.memory_space<vmem>>, %arg3: memref<1x64xf32, #tpu.memory_space<vmem>>, %arg4: memref<64x128xbf16, #tpu.memory_space<vmem>>, %arg5: memref<1x128xf32, #tpu.memory_space<vmem>>, %arg6: memref<128x128xbf16, #tpu.memory_space<vmem>>, %arg7: memref<1x128xf32, #tpu.memory_space<vmem>>, %arg8: memref<128x64xbf16, #tpu.memory_space<vmem>>, %arg9: memref<1x64xf32, #tpu.memory_space<vmem>>, %arg10: memref<1x64xf32, #tpu.memory_space<vmem>>, %arg11: memref<1x1xf32, #tpu.memory_space<vmem>>, %arg12: memref<128x1xf32, #tpu.memory_space<vmem>>) attributes {dimension_semantics = [#tpu.dimension_semantics<parallel>], iteration_bounds = array<i64: 1>, scalar_prefetch = 0 : i64, scratch_operands = 0 : i64, tpu.core_type = #tpu.core_type<tc>, window_params = [{transform_indices = @transform_0, window_bounds = array<i64: 128, 8>}, {pipeline_mode = #tpu.pipeline_mode<synchronous>, transform_indices = @transform_1, window_bounds = array<i64: 8, 64>}, {pipeline_mode = #tpu.pipeline_mode<synchronous>, transform_indices = @transform_2, window_bounds = array<i64: 1, 64>}, {pipeline_mode = #tpu.pipeline_mode<synchronous>, transform_indices = @transform_3, window_bounds = array<i64: 64, 128>}, {pipeline_mode = #tpu.pipeline_mode<synchronous>, transform_indices = @transform_4, window_bounds = array<i64: 1, 128>}, {pipeline_mode = #tpu.pipeline_mode<synchronous>, transform_indices = @transform_5, window_bounds = array<i64: 128, 128>}, {pipeline_mode = #tpu.pipeline_mode<synchronous>, transform_indices = @transform_6, window_bounds = array<i64: 1, 128>}, {pipeline_mode = #tpu.pipeline_mode<synchronous>, transform_indices = @transform_7, window_bounds = array<i64: 128, 64>}, {pipeline_mode = #tpu.pipeline_mode<synchronous>, transform_indices = @transform_8, window_bounds = array<i64: 1, 64>}, {pipeline_mode = #tpu.pipeline_mode<synchronous>, transform_indices = @transform_9, window_bounds = array<i64: 1, 64>}, {pipeline_mode = #tpu.pipeline_mode<synchronous>, transform_indices = @transform_10, window_bounds = array<i64: 1, 1>}, {transform_indices = @transform_11, window_bounds = array<i64: 128, 1>}]} {
    %c0 = arith.constant 0 : index
    %c0_0 = arith.constant 0 : index
    %0 = vector.load %arg1[%c0, %c0_0] : memref<128x8xf32, #tpu.memory_space<vmem>>, vector<128x8xf32>
    %1 = arith.truncf %0 : vector<128x8xf32> to vector<128x8xbf16>
    %c0_1 = arith.constant 0 : index
    %c0_2 = arith.constant 0 : index
    %2 = vector.load %arg2[%c0_1, %c0_2] : memref<8x64xf32, #tpu.memory_space<vmem>>, vector<8x64xf32>
    %3 = arith.truncf %2 : vector<8x64xf32> to vector<8x64xbf16>
    %cst = arith.constant dense<0.000000e+00> : vector<128x64xf32>
    %4 = tpu.matmul %1, %3, %cst {dimension_numbers = #tpu.dot_dimension_numbers<[1], [0], [0], [1], [0, 0, 1, 1], [], []>} : vector<128x8xbf16>, vector<8x64xbf16>, vector<128x64xf32> -> vector<128x64xf32>
    %c0_3 = arith.constant 0 : index
    %c0_4 = arith.constant 0 : index
    %5 = vector.load %arg3[%c0_3, %c0_4] : memref<1x64xf32, #tpu.memory_space<vmem>>, vector<1x64xf32>
    %6 = vector.broadcast %5 : vector<1x64xf32> to vector<128x64xf32>
    %7 = arith.addf %4, %6 : vector<128x64xf32>
    %cst_5 = arith.constant 0.000000e+00 : f32
    %8 = vector.broadcast %cst_5 : f32 to vector<128x64xf32>
    %9 = arith.maximumf %7, %8 : vector<128x64xf32>
    %10 = arith.truncf %9 : vector<128x64xf32> to vector<128x64xbf16>
    %c0_6 = arith.constant 0 : index
    %c0_7 = arith.constant 0 : index
    %11 = vector.load %arg4[%c0_6, %c0_7] : memref<64x128xbf16, #tpu.memory_space<vmem>>, vector<64x128xbf16>
    %cst_8 = arith.constant dense<0.000000e+00> : vector<128x128xf32>
    %12 = tpu.matmul %10, %11, %cst_8 {dimension_numbers = #tpu.dot_dimension_numbers<[1], [0], [0], [1], [0, 0, 1, 1], [], []>} : vector<128x64xbf16>, vector<64x128xbf16>, vector<128x128xf32> -> vector<128x128xf32>
    %c0_9 = arith.constant 0 : index
    %c0_10 = arith.constant 0 : index
    %13 = vector.load %arg5[%c0_9, %c0_10] : memref<1x128xf32, #tpu.memory_space<vmem>>, vector<1x128xf32>
    %14 = vector.broadcast %13 : vector<1x128xf32> to vector<128x128xf32>
    %15 = arith.addf %12, %14 : vector<128x128xf32>
    %cst_11 = arith.constant 0.000000e+00 : f32
    %16 = vector.broadcast %cst_11 : f32 to vector<128x128xf32>
    %17 = arith.maximumf %15, %16 : vector<128x128xf32>
    %18 = arith.truncf %17 : vector<128x128xf32> to vector<128x128xbf16>
    %c0_12 = arith.constant 0 : index
    %c0_13 = arith.constant 0 : index
    %19 = vector.load %arg6[%c0_12, %c0_13] : memref<128x128xbf16, #tpu.memory_space<vmem>>, vector<128x128xbf16>
    %cst_14 = arith.constant dense<0.000000e+00> : vector<128x128xf32>
    %20 = tpu.matmul %18, %19, %cst_14 {dimension_numbers = #tpu.dot_dimension_numbers<[1], [0], [0], [1], [0, 0, 1, 1], [], []>} : vector<128x128xbf16>, vector<128x128xbf16>, vector<128x128xf32> -> vector<128x128xf32>
    %c0_15 = arith.constant 0 : index
    %c0_16 = arith.constant 0 : index
    %21 = vector.load %arg7[%c0_15, %c0_16] : memref<1x128xf32, #tpu.memory_space<vmem>>, vector<1x128xf32>
    %22 = vector.broadcast %21 : vector<1x128xf32> to vector<128x128xf32>
    %23 = arith.addf %20, %22 : vector<128x128xf32>
    %cst_17 = arith.constant 0.000000e+00 : f32
    %24 = vector.broadcast %cst_17 : f32 to vector<128x128xf32>
    %25 = arith.maximumf %23, %24 : vector<128x128xf32>
    %26 = arith.truncf %25 : vector<128x128xf32> to vector<128x128xbf16>
    %c0_18 = arith.constant 0 : index
    %c0_19 = arith.constant 0 : index
    %27 = vector.load %arg8[%c0_18, %c0_19] : memref<128x64xbf16, #tpu.memory_space<vmem>>, vector<128x64xbf16>
    %cst_20 = arith.constant dense<0.000000e+00> : vector<128x64xf32>
    %28 = tpu.matmul %26, %27, %cst_20 {dimension_numbers = #tpu.dot_dimension_numbers<[1], [0], [0], [1], [0, 0, 1, 1], [], []>} : vector<128x128xbf16>, vector<128x64xbf16>, vector<128x64xf32> -> vector<128x64xf32>
    %c0_21 = arith.constant 0 : index
    %c0_22 = arith.constant 0 : index
    %29 = vector.load %arg9[%c0_21, %c0_22] : memref<1x64xf32, #tpu.memory_space<vmem>>, vector<1x64xf32>
    %30 = vector.broadcast %29 : vector<1x64xf32> to vector<128x64xf32>
    %31 = arith.addf %28, %30 : vector<128x64xf32>
    %cst_23 = arith.constant 0.000000e+00 : f32
    %32 = vector.broadcast %cst_23 : f32 to vector<128x64xf32>
    %33 = arith.maximumf %31, %32 : vector<128x64xf32>
    %c0_24 = arith.constant 0 : index
    %c0_25 = arith.constant 0 : index
    %34 = vector.load %arg10[%c0_24, %c0_25] : memref<1x64xf32, #tpu.memory_space<vmem>>, vector<1x64xf32>
    %35 = vector.broadcast %34 : vector<1x64xf32> to vector<128x64xf32>
    %36 = arith.mulf %33, %35 : vector<128x64xf32>
    %cst_26 = arith.constant dense<0.000000e+00> : vector<128xf32>
    %37 = vector.multi_reduction <add>, %36, %cst_26 [1] : vector<128x64xf32> to vector<128xf32>
    %38 = vector.shape_cast %37 : vector<128xf32> to vector<128x1xf32>
    %c0_27 = arith.constant 0 : index
    %c0_28 = arith.constant 0 : index
    %39 = vector.load %arg11[%c0_27, %c0_28] : memref<1x1xf32, #tpu.memory_space<vmem>>, vector<1x1xf32>
    %40 = vector.broadcast %39 : vector<1x1xf32> to vector<128x1xf32>
    %41 = arith.addf %38, %40 : vector<128x1xf32>
    %c0_29 = arith.constant 0 : index
    %c0_30 = arith.constant 0 : index
    %42 = vector.load %arg12[%c0_29, %c0_30] : memref<128x1xf32, #tpu.memory_space<vmem>>, vector<128x1xf32>
    tpu.vector_store %arg12[%c0_29, %c0_30], %41 {strides = array<i32>} : memref<128x1xf32, #tpu.memory_space<vmem>>, vector<128x1xf32>,
    return
  }
  func.func @transform_0(%arg0: i32) -> (i32, i32) {
    %c0_i32 = arith.constant 0 : i32
    %c0_i32_0 = arith.constant 0 : i32
    return %arg0, %c0_i32 : i32, i32
  }
  func.func @transform_1(%arg0: i32) -> (i32, i32) {
    %c0_i32 = arith.constant 0 : i32
    %c0_i32_0 = arith.constant 0 : i32
    %c0_i32_1 = arith.constant 0 : i32
    return %c0_i32, %c0_i32_0 : i32, i32
  }
  func.func @transform_2(%arg0: i32) -> (i32, i32) {
    %c0_i32 = arith.constant 0 : i32
    %c0_i32_0 = arith.constant 0 : i32
    %c0_i32_1 = arith.constant 0 : i32
    return %c0_i32, %c0_i32_0 : i32, i32
  }
  func.func @transform_3(%arg0: i32) -> (i32, i32) {
    %c0_i32 = arith.constant 0 : i32
    %c0_i32_0 = arith.constant 0 : i32
    %c0_i32_1 = arith.constant 0 : i32
    return %c0_i32, %c0_i32_0 : i32, i32
  }
  func.func @transform_4(%arg0: i32) -> (i32, i32) {
    %c0_i32 = arith.constant 0 : i32
    %c0_i32_0 = arith.constant 0 : i32
    %c0_i32_1 = arith.constant 0 : i32
    return %c0_i32, %c0_i32_0 : i32, i32
  }
  func.func @transform_5(%arg0: i32) -> (i32, i32) {
    %c0_i32 = arith.constant 0 : i32
    %c0_i32_0 = arith.constant 0 : i32
    %c0_i32_1 = arith.constant 0 : i32
    return %c0_i32, %c0_i32_0 : i32, i32
  }
  func.func @transform_6(%arg0: i32) -> (i32, i32) {
    %c0_i32 = arith.constant 0 : i32
    %c0_i32_0 = arith.constant 0 : i32
    %c0_i32_1 = arith.constant 0 : i32
    return %c0_i32, %c0_i32_0 : i32, i32
  }
  func.func @transform_7(%arg0: i32) -> (i32, i32) {
    %c0_i32 = arith.constant 0 : i32
    %c0_i32_0 = arith.constant 0 : i32
    %c0_i32_1 = arith.constant 0 : i32
    return %c0_i32, %c0_i32_0 : i32, i32
  }
  func.func @transform_8(%arg0: i32) -> (i32, i32) {
    %c0_i32 = arith.constant 0 : i32
    %c0_i32_0 = arith.constant 0 : i32
    %c0_i32_1 = arith.constant 0 : i32
    return %c0_i32, %c0_i32_0 : i32, i32
  }
  func.func @transform_9(%arg0: i32) -> (i32, i32) {
    %c0_i32 = arith.constant 0 : i32
    %c0_i32_0 = arith.constant 0 : i32
    %c0_i32_1 = arith.constant 0 : i32
    return %c0_i32, %c0_i32_0 : i32, i32
  }
  func.func @transform_10(%arg0: i32) -> (i32, i32) {
    %c0_i32 = arith.constant 0 : i32
    %c0_i32_0 = arith.constant 0 : i32
    %c0_i32_1 = arith.constant 0 : i32
    return %c0_i32, %c0_i32_0 : i32, i32
  }
  func.func @transform_11(%arg0: i32) -> (i32, i32) {
    %c0_i32 = arith.constant 0 : i32
    %c0_i32_0 = arith.constant 0 : i32
    return %arg0, %c0_i32 : i32, i32
  }
}

module attributes {stable_mosaic.version = 11 : i64} {
  func.func @_valuenet_kernel(%arg0: i32, %arg1: memref<128x8xf32, #tpu.memory_space<vmem>>, %arg2: memref<8x64xf32, #tpu.memory_space<vmem>>, %arg3: memref<1x64xf32, #tpu.memory_space<vmem>>, %arg4: memref<64x128xbf16, #tpu.memory_space<vmem>>, %arg5: memref<1x128xf32, #tpu.memory_space<vmem>>, %arg6: memref<128x128xbf16, #tpu.memory_space<vmem>>, %arg7: memref<1x128xf32, #tpu.memory_space<vmem>>, %arg8: memref<128x64xbf16, #tpu.memory_space<vmem>>, %arg9: memref<1x64xf32, #tpu.memory_space<vmem>>, %arg10: memref<1x64xf32, #tpu.memory_space<vmem>>, %arg11: memref<1x1xf32, #tpu.memory_space<vmem>>, %arg12: memref<128x1xf32, #tpu.memory_space<vmem>>) attributes {dimension_semantics = [#tpu.dimension_semantics<parallel>], iteration_bounds = array<i64: 1>, scalar_prefetch = 0 : i64, scratch_operands = 0 : i64, tpu.core_type = #tpu.core_type<tc>, window_params = [{transform_indices = @transform_0, window_bounds = array<i64: 128, 8>}, {pipeline_mode = #tpu.pipeline_mode<synchronous>, transform_indices = @transform_1, window_bounds = array<i64: 8, 64>}, {pipeline_mode = #tpu.pipeline_mode<synchronous>, transform_indices = @transform_2, window_bounds = array<i64: 1, 64>}, {pipeline_mode = #tpu.pipeline_mode<synchronous>, transform_indices = @transform_3, window_bounds = array<i64: 64, 128>}, {pipeline_mode = #tpu.pipeline_mode<synchronous>, transform_indices = @transform_4, window_bounds = array<i64: 1, 128>}, {pipeline_mode = #tpu.pipeline_mode<synchronous>, transform_indices = @transform_5, window_bounds = array<i64: 128, 128>}, {pipeline_mode = #tpu.pipeline_mode<synchronous>, transform_indices = @transform_6, window_bounds = array<i64: 1, 128>}, {pipeline_mode = #tpu.pipeline_mode<synchronous>, transform_indices = @transform_7, window_bounds = array<i64: 128, 64>}, {pipeline_mode = #tpu.pipeline_mode<synchronous>, transform_indices = @transform_8, window_bounds = array<i64: 1, 64>}, {pipeline_mode = #tpu.pipeline_mode<synchronous>, transform_indices = @transform_9, window_bounds = array<i64: 1, 64>}, {pipeline_mode = #tpu.pipeline_mode<synchronous>, transform_indices = @transform_10, window_bounds = array<i64: 1, 1>}, {transform_indices = @transform_11, window_bounds = array<i64: 128, 1>}]} {
    %c0 = arith.constant 0 : index
    %c0_0 = arith.constant 0 : index
    %0 = vector.load %arg1[%c0, %c0_0] : memref<128x8xf32, #tpu.memory_space<vmem>>, vector<128x8xf32>
    %1 = arith.truncf %0 : vector<128x8xf32> to vector<128x8xbf16>
    %c0_1 = arith.constant 0 : index
    %c0_2 = arith.constant 0 : index
    %2 = vector.load %arg2[%c0_1, %c0_2] : memref<8x64xf32, #tpu.memory_space<vmem>>, vector<8x64xf32>
    %3 = arith.truncf %2 : vector<8x64xf32> to vector<8x64xbf16>
    %cst = arith.constant dense<0.000000e+00> : vector<128x64xf32>
    %4 = tpu.matmul %1, %3, %cst {dimension_numbers = #tpu.dot_dimension_numbers<[1], [0], [0], [1], [0, 0, 1, 1], [], []>} : vector<128x8xbf16>, vector<8x64xbf16>, vector<128x64xf32> -> vector<128x64xf32>
    %c0_3 = arith.constant 0 : index
    %c0_4 = arith.constant 0 : index
    %5 = vector.load %arg3[%c0_3, %c0_4] : memref<1x64xf32, #tpu.memory_space<vmem>>, vector<1x64xf32>
    %6 = vector.broadcast %5 : vector<1x64xf32> to vector<128x64xf32>
    %7 = arith.addf %4, %6 : vector<128x64xf32>
    %cst_5 = arith.constant 0.000000e+00 : f32
    %8 = vector.broadcast %cst_5 : f32 to vector<128x64xf32>
    %9 = arith.maximumf %7, %8 : vector<128x64xf32>
    %10 = arith.truncf %9 : vector<128x64xf32> to vector<128x64xbf16>
    %c0_6 = arith.constant 0 : index
    %c0_7 = arith.constant 0 : index
    %11 = vector.load %arg4[%c0_6, %c0_7] : memref<64x128xbf16, #tpu.memory_space<vmem>>, vector<64x128xbf16>
    %cst_8 = arith.constant dense<0.000000e+00> : vector<128x128xf32>
    %12 = tpu.matmul %10, %11, %cst_8 {dimension_numbers = #tpu.dot_dimension_numbers<[1], [0], [0], [1], [0, 0, 1, 1], [], []>} : vector<128x64xbf16>, vector<64x128xbf16>, vector<128x128xf32> -> vector<128x128xf32>
    %c0_9 = arith.constant 0 : index
    %c0_10 = arith.constant 0 : index
    %13 = vector.load %arg5[%c0_9, %c0_10] : memref<1x128xf32, #tpu.memory_space<vmem>>, vector<1x128xf32>
    %14 = vector.broadcast %13 : vector<1x128xf32> to vector<128x128xf32>
    %15 = arith.addf %12, %14 : vector<128x128xf32>
    %cst_11 = arith.constant 0.000000e+00 : f32
    %16 = vector.broadcast %cst_11 : f32 to vector<128x128xf32>
    %17 = arith.maximumf %15, %16 : vector<128x128xf32>
    %18 = arith.truncf %17 : vector<128x128xf32> to vector<128x128xbf16>
    %c0_12 = arith.constant 0 : index
    %c0_13 = arith.constant 0 : index
    %19 = vector.load %arg6[%c0_12, %c0_13] : memref<128x128xbf16, #tpu.memory_space<vmem>>, vector<128x128xbf16>
    %cst_14 = arith.constant dense<0.000000e+00> : vector<128x128xf32>
    %20 = tpu.matmul %18, %19, %cst_14 {dimension_numbers = #tpu.dot_dimension_numbers<[1], [0], [0], [1], [0, 0, 1, 1], [], []>} : vector<128x128xbf16>, vector<128x128xbf16>, vector<128x128xf32> -> vector<128x128xf32>
    %c0_15 = arith.constant 0 : index
    %c0_16 = arith.constant 0 : index
    %21 = vector.load %arg7[%c0_15, %c0_16] : memref<1x128xf32, #tpu.memory_space<vmem>>, vector<1x128xf32>
    %22 = vector.broadcast %21 : vector<1x128xf32> to vector<128x128xf32>
    %23 = arith.addf %20, %22 : vector<128x128xf32>
    %cst_17 = arith.constant 0.000000e+00 : f32
    %24 = vector.broadcast %cst_17 : f32 to vector<128x128xf32>
    %25 = arith.maximumf %23, %24 : vector<128x128xf32>
    %26 = arith.truncf %25 : vector<128x128xf32> to vector<128x128xbf16>
    %c0_18 = arith.constant 0 : index
    %c0_19 = arith.constant 0 : index
    %27 = vector.load %arg8[%c0_18, %c0_19] : memref<128x64xbf16, #tpu.memory_space<vmem>>, vector<128x64xbf16>
    %cst_20 = arith.constant dense<0.000000e+00> : vector<128x64xf32>
    %28 = tpu.matmul %26, %27, %cst_20 {dimension_numbers = #tpu.dot_dimension_numbers<[1], [0], [0], [1], [0, 0, 1, 1], [], []>} : vector<128x128xbf16>, vector<128x64xbf16>, vector<128x64xf32> -> vector<128x64xf32>
    %c0_21 = arith.constant 0 : index
    %c0_22 = arith.constant 0 : index
    %29 = vector.load %arg9[%c0_21, %c0_22] : memref<1x64xf32, #tpu.memory_space<vmem>>, vector<1x64xf32>
    %30 = vector.broadcast %29 : vector<1x64xf32> to vector<128x64xf32>
    %31 = arith.addf %28, %30 : vector<128x64xf32>
    %cst_23 = arith.constant 0.000000e+00 : f32
    %32 = vector.broadcast %cst_23 : f32 to vector<128x64xf32>
    %33 = arith.maximumf %31, %32 : vector<128x64xf32>
    %c0_24 = arith.constant 0 : index
    %c0_25 = arith.constant 0 : index
    %34 = vector.load %arg10[%c0_24, %c0_25] : memref<1x64xf32, #tpu.memory_space<vmem>>, vector<1x64xf32>
    %35 = vector.broadcast %34 : vector<1x64xf32> to vector<128x64xf32>
    %36 = arith.mulf %33, %35 : vector<128x64xf32>
    %cst_26 = arith.constant dense<0.000000e+00> : vector<128xf32>
    %37 = vector.multi_reduction <add>, %36, %cst_26 [1] : vector<128x64xf32> to vector<128xf32>
    %38 = vector.shape_cast %37 : vector<128xf32> to vector<128x1xf32>
    %c0_27 = arith.constant 0 : index
    %c0_28 = arith.constant 0 : index
    %39 = vector.load %arg11[%c0_27, %c0_28] : memref<1x1xf32, #tpu.memory_space<vmem>>, vector<1x1xf32>
    %40 = vector.broadcast %39 : vector<1x1xf32> to vector<128x1xf32>
    %41 = arith.addf %38, %40 : vector<128x1xf32>
    %c0_29 = arith.constant 0 : index
    %c0_30 = arith.constant 0 : index
    %42 = vector.load %arg12[%c0_29, %c0_30] : memref<128x1xf32, #tpu.memory_space<vmem>>, vector<128x1xf32>
    tpu.vector_store %arg12[%c0_29, %c0_30], %41 {strides = array<i32>} : memref<128x1xf32, #tpu.memory_space<vmem>>, vector<128x1xf32>,
    return
  }
  func.func @transform_0(%arg0: i32) -> (i32, i32) {
    %c0_i32 = arith.constant 0 : i32
    %c0_i32_0 = arith.constant 0 : i32
    return %arg0, %c0_i32 : i32, i32
  }
  func.func @transform_1(%arg0: i32) -> (i32, i32) {
    %c0_i32 = arith.constant 0 : i32
    %c0_i32_0 = arith.constant 0 : i32
    %c0_i32_1 = arith.constant 0 : i32
    return %c0_i32, %c0_i32_0 : i32, i32
  }
  func.func @transform_2(%arg0: i32) -> (i32, i32) {
    %c0_i32 = arith.constant 0 : i32
    %c0_i32_0 = arith.constant 0 : i32
    %c0_i32_1 = arith.constant 0 : i32
    return %c0_i32, %c0_i32_0 : i32, i32
  }
  func.func @transform_3(%arg0: i32) -> (i32, i32) {
    %c0_i32 = arith.constant 0 : i32
    %c0_i32_0 = arith.constant 0 : i32
    %c0_i32_1 = arith.constant 0 : i32
    return %c0_i32, %c0_i32_0 : i32, i32
  }
  func.func @transform_4(%arg0: i32) -> (i32, i32) {
    %c0_i32 = arith.constant 0 : i32
    %c0_i32_0 = arith.constant 0 : i32
    %c0_i32_1 = arith.constant 0 : i32
    return %c0_i32, %c0_i32_0 : i32, i32
  }
  func.func @transform_5(%arg0: i32) -> (i32, i32) {
    %c0_i32 = arith.constant 0 : i32
    %c0_i32_0 = arith.constant 0 : i32
    %c0_i32_1 = arith.constant 0 : i32
    return %c0_i32, %c0_i32_0 : i32, i32
  }
  func.func @transform_6(%arg0: i32) -> (i32, i32) {
    %c0_i32 = arith.constant 0 : i32
    %c0_i32_0 = arith.constant 0 : i32
    %c0_i32_1 = arith.constant 0 : i32
    return %c0_i32, %c0_i32_0 : i32, i32
  }
  func.func @transform_7(%arg0: i32) -> (i32, i32) {
    %c0_i32 = arith.constant 0 : i32
    %c0_i32_0 = arith.constant 0 : i32
    %c0_i32_1 = arith.constant 0 : i32
    return %c0_i32, %c0_i32_0 : i32, i32
  }
  func.func @transform_8(%arg0: i32) -> (i32, i32) {
    %c0_i32 = arith.constant 0 : i32
    %c0_i32_0 = arith.constant 0 : i32
    %c0_i32_1 = arith.constant 0 : i32
    return %c0_i32, %c0_i32_0 : i32, i32
  }
  func.func @transform_9(%arg0: i32) -> (i32, i32) {
    %c0_i32 = arith.constant 0 : i32
    %c0_i32_0 = arith.constant 0 : i32
    %c0_i32_1 = arith.constant 0 : i32
    return %c0_i32, %c0_i32_0 : i32, i32
  }
  func.func @transform_10(%arg0: i32) -> (i32, i32) {
    %c0_i32 = arith.constant 0 : i32
    %c0_i32_0 = arith.constant 0 : i32
    %c0_i32_1 = arith.constant 0 : i32
    return %c0_i32, %c0_i32_0 : i32, i32
  }
  func.func @transform_11(%arg0: i32) -> (i32, i32) {
    %c0_i32 = arith.constant 0 : i32
    %c0_i32_0 = arith.constant 0 : i32
    return %arg0, %c0_i32 : i32, i32
  }
}

</mosaic_0001>

<bundles_post_ra>
// kernel: tpu_custom_call.1
= control target key start
LH: loop header
LB: loop body
LE: loop exit
PB: predicated region body
PF: predicated region fallthrough
CT: control target
= control target key end

     0   :  { %vm96_vm0 = vcmask 1043456   ;;  %vm71_vm1 = vcmask 64512   ;;  %vm209_vm2 = vcmask 523264   ;;  %vm669_vm3 = vcmask 7168   ;;  %s1169_s1 = inlined_call_operand.vmem [shape: f32[8,64], index: 1, kind: input, shape index: {}]   ;;  %s1170_s0 = inlined_call_operand.vmem [shape: f32[128,8], index: 0, kind: input, shape index: {}]   ;;  %s1171_s2 = inlined_call_operand.vmem [shape: f32[1,64], index: 2, kind: input, shape index: {}]   ;;  %s1172_s3 = inlined_call_operand.vmem [shape: bf16[64,128], index: 3, kind: input, shape index: {}]   ;;  %s1173_s4 = inlined_call_operand.vmem [shape: f32[1,128], index: 4, kind: input, shape index: {}]   ;;  %s1174_s5 = inlined_call_operand.vmem [shape: bf16[128,128], index: 5, kind: input, shape index: {}]   ;;  %s1175_s6 = inlined_call_operand.vmem [shape: f32[1,128], index: 6, kind: input, shape index: {}]   ;;  %s1176_s7 = inlined_call_operand.vmem [shape: bf16[128,64], index: 7, kind: input, shape index: {}]   ;;  %s1177_s8 = inlined_call_operand.vmem [shape: f32[1,64], index: 8, kind: input, shape index: {}]   ;;  %s1178_s9 = inlined_call_operand.vmem [shape: f32[1,64], index: 9, kind: input, shape index: {}]   ;;  %s1179_s10 = inlined_call_operand.<no memory space> [shape: f32[1,1], index: 10, kind: input, shape index: {}]   ;;  %s1180_s11 = inlined_call_operand.vmem [shape: f32[128,1], index: 11, kind: output, shape index: {}]  }
   0x1   :  { %v65_v0 = vld [vmem:[%s1169_s1] sm:$0xff]  ;;  %v42_v2 = vld [vmem:[%s1170_s0 + $0x8] sm:$0xff]  ;;  %v43_v6 = vld [vmem:[%s1170_s0 + $0x10] sm:$0xff] }
   0x2   :  { %v41_v1 = vld [vmem:[%s1170_s0] sm:$0xff]  ;;  %v66_v3 = vpack.c.bf16 %v65_v0, %v65_v0  ;;  %v44_v7 = vld [vmem:[%s1170_s0 + $0x18] sm:$0xff]  ;;  %v46_v10 = vld [vmem:[%s1170_s0 + $0x28] sm:$0xff] }
   0x3   :  { %v57_v5 = vpack.c.bf16 %v42_v2, %v41_v1  ;;  %v58_v8 = vpack.c.bf16 %v44_v7, %v43_v6  ;;  %v45_v9 = vld [vmem:[%s1170_s0 + $0x20] sm:$0xff]  ;;  %v47_v12 = vld [vmem:[%s1170_s0 + $0x30] sm:$0xff]  ;;  %v48_v13 = vld [vmem:[%s1170_s0 + $0x38] sm:$0xff] }
   0x4   :  { %v98_v4 = vsel %vm96_vm0, %v66_v3, 0  ;;  %v59_v11 = vpack.c.bf16 %v46_v10, %v45_v9  ;;  %v60_v14 = vpack.c.bf16 %v48_v13, %v47_v12  ;;  %v49_v15 = vld [vmem:[%s1170_s0 + $0x40] sm:$0xff]  ;;  %v50_v16 = vld [vmem:[%s1170_s0 + $0x48] sm:$0xff]  ;;  %v51_v18 = vld [vmem:[%s1170_s0 + $0x50] sm:$0xff] }
   0x5   :  { %107 = vmatpush.bf16.msra.mxu0 %v98_v4  ;;  %v61_v17 = vpack.c.bf16 %v50_v16, %v49_v15  ;;  %v52_v19 = vld [vmem:[%s1170_s0 + $0x58] sm:$0xff]  ;;  %v53_v21 = vld [vmem:[%s1170_s0 + $0x60] sm:$0xff]  ;;  %v54_v22 = vld [vmem:[%s1170_s0 + $0x68] sm:$0xff] }
   0x6   :  { %v62_v20 = vpack.c.bf16 %v52_v19, %v51_v18  ;;  %v789_v23 = vld [vmem:[%s1172_s3 + $0x18] sm:$0xff]  ;;  %v63_v24 = vpack.c.bf16 %v54_v22, %v53_v21  ;;  %v788_v25 = vld [vmem:[%s1172_s3 + $0x10] sm:$0xff]  ;;  %v787_v26 = vld [vmem:[%s1172_s3 + $0x8] sm:$0xff] }
   0x7   :  { %238 = vmatpush.bf16.msra.mxu1 %v789_v23  ;;  %v786_v27 = vld [vmem:[%s1172_s3] sm:$0xff]  ;;  %v55_v28 = vld [vmem:[%s1170_s0 + $0x70] sm:$0xff]  ;;  %v56_v29 = vld [vmem:[%s1170_s0 + $0x78] sm:$0xff] }
   0x8   :  { %690 = vmatmul.msk.bf16.vlgmr.msra.gmra.mxu0 %vm71_vm1, %v57_v5  ;;  %v64_v30 = vpack.c.bf16 %v56_v29, %v55_v28  ;;  %v946_v32 = vld [vmem:[%s1171_s2] ss:$0 sm:$0xff]  ;;  %v797_v7 = vld [vmem:[%s1174_s5 + $0x38] sm:$0xff]  ;;  %v795_v13 = vld [vmem:[%s1174_s5 + $0x28] sm:$0xff] }
   0x9   :  { %375 = vmatpush.bf16.msra.mxu2 %v797_v7  ;;  %v793_v18 = vld [vmem:[%s1174_s5 + $0x18] sm:$0xff]  ;;  %v792_v22 = vld [vmem:[%s1174_s5 + $0x10] sm:$0xff] }
   0xb   :  { %239 = vmatpush.bf16.msra.mxu1 %v788_v25  ;;  %v790_v25 = vld [vmem:[%s1174_s5] sm:$0xff] }
   0xf   :  { %240 = vmatpush.bf16.msra.mxu1 %v787_v26 }
  0x13   :  { %241 = vmatpush.bf16.msra.mxu1 %v786_v27 }
  0x18   :  { %691 = vmatmul.msk.bf16.gmra.mxu0 %vm71_vm1, %v58_v8 }
  0x28   :  { %692 = vmatmul.msk.bf16.gmra.mxu0 %vm71_vm1, %v59_v11  ;;  %v796_v11 = vld [vmem:[%s1174_s5 + $0x30] sm:$0xff] }
  0x29   :  { %376 = vmatpush.bf16.msra.mxu2 %v796_v11  ;;  %v805_v11 = vld [vmem:[%s1176_s7 + $0x38] sm:$0xff] }
  0x2a   :  { %516 = vmatpush.bf16.msra.mxu3 %v805_v11 }
  0x2d   :  { %377 = vmatpush.bf16.msra.mxu2 %v795_v13  ;;  %v804_v13 = vld [vmem:[%s1176_s7 + $0x30] sm:$0xff] }
  0x2e   :  { %517 = vmatpush.bf16.msra.mxu3 %v804_v13 }
  0x38   :  { %693 = vmatmul.msk.bf16.gmra.mxu0 %vm71_vm1, %v60_v14  ;;  %v794_v14 = vld [vmem:[%s1174_s5 + $0x20] sm:$0xff] }
  0x39   :  { %378 = vmatpush.bf16.msra.mxu2 %v794_v14  ;;  %v803_v14 = vld [vmem:[%s1176_s7 + $0x28] sm:$0xff] }
  0x3a   :  { %518 = vmatpush.bf16.msra.mxu3 %v803_v14 }
  0x3d   :  { %379 = vmatpush.bf16.msra.mxu2 %v793_v18  ;;  %v802_v18 = vld [vmem:[%s1176_s7 + $0x20] sm:$0xff] }
  0x3e   :  { %519 = vmatpush.bf16.msra.mxu3 %v802_v18 }
  0x41   :  { %380 = vmatpush.bf16.msra.mxu2 %v792_v22 }
  0x48   :  { %694 = vmatmul.msk.bf16.gmra.mxu0 %vm71_vm1, %v61_v17 }
  0x58   :  { %695 = vmatmul.msk.bf16.gmra.mxu0 %vm71_vm1, %v62_v20 }
  0x68   :  { %696 = vmatmul.msk.bf16.gmra.mxu0 %vm71_vm1, %v63_v24  ;;  %v791_v24 = vld [vmem:[%s1174_s5 + $0x8] sm:$0xff] }
  0x69   :  { %381 = vmatpush.bf16.msra.mxu2 %v791_v24  ;;  %v800_v24 = vld [vmem:[%s1176_s7 + $0x10] sm:$0xff] }
  0x6d   :  { %382 = vmatpush.bf16.msra.mxu2 %v790_v25 }
  0x78   :  { %697 = vmatmul.msk.bf16.gmra.mxu0 %vm71_vm1, %v64_v30 }
  0x85   :  { %v109_v31 = vpop.f32.mrf.mxu0 }
  0x86   :  { %v110_v33 = vadd.f32 %v946_v32, %v109_v31 }
  0x88   :  { %v149_v36 = vmax.f32 %v110_v33, 0.0 }
  0x8d   :  { %v111_v34 = vpop.f32.mrf.mxu0 }
  0x8e   :  { %v112_v35 = vadd.f32 %v946_v32, %v111_v34  ;;  %v999_v34 = vld [vmem:[%s1173_s4] ss:$0 sm:$0xff] }
  0x90   :  { %v150_v37 = vmax.f32 %v112_v35, 0.0 }
  0x92   :  { %v165_v38 = vpack.c.bf16 %v150_v37, %v149_v36 }
  0x94   :  { %714 = vmatmul.msk.bf16.vlgmr.msra.gmra.mxu1 %vm209_vm2, %v165_v38 }
  0x95   :  { %v114_v39 = vpop.f32.mrf.mxu0 }
  0x96   :  { %v115_v40 = vadd.f32 %v946_v32, %v114_v39 }
  0x98   :  { %v151_v43 = vmax.f32 %v115_v40, 0.0 }
  0x9d   :  { %v116_v41 = vpop.f32.mrf.mxu0 }
  0x9e   :  { %v117_v42 = vadd.f32 %v946_v32, %v116_v41 }
  0xa0   :  { %v152_v44 = vmax.f32 %v117_v42, 0.0 }
  0xa2   :  { %v166_v45 = vpack.c.bf16 %v152_v44, %v151_v43 }
  0xa4   :  { %715 = vmatmul.msk.bf16.gmra.mxu1 %vm209_vm2, %v166_v45 }
  0xa5   :  { %v119_v46 = vpop.f32.mrf.mxu0 }
  0xa6   :  { %v120_v47 = vadd.f32 %v946_v32, %v119_v46 }
  0xa8   :  { %v153_v50 = vmax.f32 %v120_v47, 0.0 }
  0xad   :  { %v121_v48 = vpop.f32.mrf.mxu0 }
  0xae   :  { %v122_v49 = vadd.f32 %v946_v32, %v121_v48 }
  0xb0   :  { %v154_v51 = vmax.f32 %v122_v49, 0.0 }
  0xb2   :  { %v167_v52 = vpack.c.bf16 %v154_v51, %v153_v50 }
  0xb4   :  { %716 = vmatmul.msk.bf16.gmra.mxu1 %vm209_vm2, %v167_v52 }
  0xb5   :  { %v124_v53 = vpop.f32.mrf.mxu0 }
  0xb6   :  { %v125_v54 = vadd.f32 %v946_v32, %v124_v53 }
  0xb8   :  { %v155_v57 = vmax.f32 %v125_v54, 0.0 }
  0xbd   :  { %v126_v55 = vpop.f32.mrf.mxu0 }
  0xbe   :  { %v127_v56 = vadd.f32 %v946_v32, %v126_v55 }
  0xc0   :  { %v156_v58 = vmax.f32 %v127_v56, 0.0 }
  0xc2   :  { %v168_v59 = vpack.c.bf16 %v156_v58, %v155_v57 }
  0xc4   :  { %717 = vmatmul.msk.bf16.gmra.mxu1 %vm209_vm2, %v168_v59 }
  0xc5   :  { %v129_v60 = vpop.f32.mrf.mxu0 }
  0xc6   :  { %v130_v61 = vadd.f32 %v946_v32, %v129_v60 }
  0xc8   :  { %v157_v0 = vmax.f32 %v130_v61, 0.0 }
  0xcd   :  { %v131_v62 = vpop.f32.mrf.mxu0 }
  0xce   :  { %v132_v63 = vadd.f32 %v946_v32, %v131_v62 }
  0xd0   :  { %v158_v1 = vmax.f32 %v132_v63, 0.0 }
  0xd2   :  { %v169_v2 = vpack.c.bf16 %v158_v1, %v157_v0 }
  0xd4   :  { %718 = vmatmul.msk.bf16.gmra.mxu1 %vm209_vm2, %v169_v2 }
  0xd5   :  { %v134_v3 = vpop.f32.mrf.mxu0 }
  0xd6   :  { %v135_v4 = vadd.f32 %v946_v32, %v134_v3 }
  0xd8   :  { %v159_v8 = vmax.f32 %v135_v4, 0.0 }
  0xdd   :  { %v136_v5 = vpop.f32.mrf.mxu0 }
  0xde   :  { %v137_v6 = vadd.f32 %v946_v32, %v136_v5 }
  0xe0   :  { %v160_v9 = vmax.f32 %v137_v6, 0.0 }
  0xe2   :  { %v170_v10 = vpack.c.bf16 %v160_v9, %v159_v8 }
  0xe4   :  { %719 = vmatmul.msk.bf16.gmra.mxu1 %vm209_vm2, %v170_v10 }
  0xe5   :  { %v139_v12 = vpop.f32.mrf.mxu0 }
  0xe6   :  { %v140_v15 = vadd.f32 %v946_v32, %v139_v12 }
  0xe8   :  { %v161_v19 = vmax.f32 %v140_v15, 0.0 }
  0xed   :  { %v141_v16 = vpop.f32.mrf.mxu0 }
  0xee   :  { %v142_v17 = vadd.f32 %v946_v32, %v141_v16 }
  0xf0   :  { %v162_v20 = vmax.f32 %v142_v17, 0.0 }
  0xf2   :  { %v171_v21 = vpack.c.bf16 %v162_v20, %v161_v19 }
  0xf4   :  { %720 = vmatmul.msk.bf16.gmra.mxu1 %vm209_vm2, %v171_v21 }
  0xf5   :  { %v144_v23 = vpop.f32.mrf.mxu0 }
  0xf6   :  { %v145_v26 = vadd.f32 %v946_v32, %v144_v23  ;;  %v801_v23 = vld [vmem:[%s1176_s7 + $0x18] sm:$0xff] }
  0xf7   :  { %520 = vmatpush.bf16.msra.mxu3 %v801_v23 }
  0xf8   :  { %v163_v29 = vmax.f32 %v145_v26, 0.0 }
  0xfb   :  { %521 = vmatpush.bf16.msra.mxu3 %v800_v24 }
  0xfd   :  { %v146_v27 = vpop.f32.mrf.mxu0 }
  0xfe   :  { %v147_v28 = vadd.f32 %v946_v32, %v146_v27  ;;  %v799_v27 = vld [vmem:[%s1176_s7 + $0x8] sm:$0xff] }
  0xff   :  { %522 = vmatpush.bf16.msra.mxu3 %v799_v27 }
 0x100   :  { %v164_v30 = vmax.f32 %v147_v28, 0.0 }
 0x102   :  { %v172_v31 = vpack.c.bf16 %v164_v30, %v163_v29 }
 0x104   :  { %721 = vmatmul.msk.bf16.gmra.mxu1 %vm209_vm2, %v172_v31  ;;  %v798_v31 = vld [vmem:[%s1176_s7] sm:$0xff] }
 0x105   :  { %523 = vmatpush.bf16.msra.mxu3 %v798_v31 }
 0x111   :  { %v243_v33 = vpop.f32.mrf.mxu1 }
 0x112   :  { %v244_v35 = vadd.f32 %v999_v34, %v243_v33 }
 0x114   :  { %v283_v38 = vmax.f32 %v244_v35, 0.0 }
 0x119   :  { %v245_v36 = vpop.f32.mrf.mxu1 }
 0x11a   :  { %v246_v37 = vadd.f32 %v999_v34, %v245_v36  ;;  %v808_v36 = vld [vmem:[%s1175_s6] ss:$0 sm:$0xff] }
 0x11c   :  { %v284_v39 = vmax.f32 %v246_v37, 0.0 }
 0x11e   :  { %v299_v40 = vpack.c.bf16 %v284_v39, %v283_v38 }
 0x120   :  { %383 = vmatmul.bf16.vlgmr.msra.gmra.mxu2 %v299_v40 }
 0x121   :  { %v248_v32 = vpop.f32.mrf.mxu1 }
 0x122   :  { %v249_v41 = vadd.f32 %v999_v34, %v248_v32 }
 0x124   :  { %v285_v44 = vmax.f32 %v249_v41, 0.0 }
 0x129   :  { %v250_v42 = vpop.f32.mrf.mxu1 }
 0x12a   :  { %v251_v43 = vadd.f32 %v999_v34, %v250_v42 }
 0x12c   :  { %v286_v45 = vmax.f32 %v251_v43, 0.0 }
 0x12e   :  { %v300_v46 = vpack.c.bf16 %v286_v45, %v285_v44 }
 0x130   :  { %388 = vmatmul.bf16.gmra.mxu2 %v300_v46 }
 0x131   :  { %v253_v47 = vpop.f32.mrf.mxu1 }
 0x132   :  { %v254_v48 = vadd.f32 %v999_v34, %v253_v47 }
 0x134   :  { %v287_v51 = vmax.f32 %v254_v48, 0.0 }
 0x139   :  { %v255_v49 = vpop.f32.mrf.mxu1 }
 0x13a   :  { %v256_v50 = vadd.f32 %v999_v34, %v255_v49 }
 0x13c   :  { %v288_v52 = vmax.f32 %v256_v50, 0.0 }
 0x13e   :  { %v301_v53 = vpack.c.bf16 %v288_v52, %v287_v51 }
 0x140   :  { %393 = vmatmul.bf16.gmra.mxu2 %v301_v53 }
 0x141   :  { %v258_v54 = vpop.f32.mrf.mxu1 }
 0x142   :  { %v259_v55 = vadd.f32 %v999_v34, %v258_v54 }
 0x144   :  { %v289_v58 = vmax.f32 %v259_v55, 0.0 }
 0x149   :  { %v260_v56 = vpop.f32.mrf.mxu1 }
 0x14a   :  { %v261_v57 = vadd.f32 %v999_v34, %v260_v56 }
 0x14c   :  { %v290_v59 = vmax.f32 %v261_v57, 0.0 }
 0x14e   :  { %v302_v60 = vpack.c.bf16 %v290_v59, %v289_v58 }
 0x150   :  { %398 = vmatmul.bf16.gmra.mxu2 %v302_v60 }
 0x151   :  { %v263_v61 = vpop.f32.mrf.mxu1 }
 0x152   :  { %v264_v62 = vadd.f32 %v999_v34, %v263_v61 }
 0x154   :  { %v291_v1 = vmax.f32 %v264_v62, 0.0 }
 0x159   :  { %v265_v63 = vpop.f32.mrf.mxu1 }
 0x15a   :  { %v266_v0 = vadd.f32 %v999_v34, %v265_v63 }
 0x15c   :  { %v292_v2 = vmax.f32 %v266_v0, 0.0 }
 0x15e   :  { %v303_v3 = vpack.c.bf16 %v292_v2, %v291_v1 }
 0x160   :  { %403 = vmatmul.bf16.gmra.mxu2 %v303_v3 }
 0x161   :  { %v268_v4 = vpop.f32.mrf.mxu1 }
 0x162   :  { %v269_v5 = vadd.f32 %v999_v34, %v268_v4 }
 0x164   :  { %v293_v8 = vmax.f32 %v269_v5, 0.0 }
 0x169   :  { %v270_v6 = vpop.f32.mrf.mxu1 }
 0x16a   :  { %v271_v7 = vadd.f32 %v999_v34, %v270_v6 }
 0x16c   :  { %v294_v9 = vmax.f32 %v271_v7, 0.0 }
 0x16e   :  { %v304_v10 = vpack.c.bf16 %v294_v9, %v293_v8 }
 0x170   :  { %408 = vmatmul.bf16.gmra.mxu2 %v304_v10 }
 0x171   :  { %v273_v12 = vpop.f32.mrf.mxu1 }
 0x172   :  { %v274_v15 = vadd.f32 %v999_v34, %v273_v12 }
 0x174   :  { %v295_v19 = vmax.f32 %v274_v15, 0.0 }
 0x179   :  { %v275_v16 = vpop.f32.mrf.mxu1 }
 0x17a   :  { %v276_v17 = vadd.f32 %v999_v34, %v275_v16 }
 0x17c   :  { %v296_v20 = vmax.f32 %v276_v17, 0.0 }
 0x17e   :  { %v305_v21 = vpack.c.bf16 %v296_v20, %v295_v19 }
 0x180   :  { %413 = vmatmul.bf16.gmra.mxu2 %v305_v21 }
 0x181   :  { %v278_v22 = vpop.f32.mrf.mxu1 }
 0x182   :  { %v279_v25 = vadd.f32 %v999_v34, %v278_v22 }
 0x184   :  { %v297_v29 = vmax.f32 %v279_v25, 0.0 }
 0x189   :  { %v280_v26 = vpop.f32.mrf.mxu1 }
 0x18a   :  { %v281_v28 = vadd.f32 %v999_v34, %v280_v26  ;;  %v1047_v26 = vld [vmem:[%s1177_s8] ss:$0 sm:$0xff] }
 0x18c   :  { %v298_v30 = vmax.f32 %v281_v28, 0.0 }
 0x18e   :  { %v306_v33 = vpack.c.bf16 %v298_v30, %v297_v29  ;;  %v1053_v29 = vld [vmem:[%s1178_s9] ss:$0 sm:$0xff] }
 0x190   :  { %418 = vmatmul.bf16.gmra.mxu2 %v306_v33 }
 0x1a3   :  { %v384_v35 = vpop.f32.mrf.mxu2 }
 0x1a4   :  { %v385_v37 = vadd.f32 %v808_v36, %v384_v35 }
 0x1a6   :  { %v424_v40 = vmax.f32 %v385_v37, 0.0 }
 0x1ab   :  { %v386_v38 = vpop.f32.mrf.mxu2 }
 0x1ac   :  { %v387_v39 = vadd.f32 %v808_v36, %v386_v38 }
 0x1ae   :  { %v425_v34 = vmax.f32 %v387_v39, 0.0 }
 0x1b0   :  { %v440_v32 = vpack.c.bf16 %v425_v34, %v424_v40 }
 0x1b2   :  { %524 = vmatmul.bf16.vlgmr.msra.gmra.mxu3 %v440_v32 }
 0x1b3   :  { %v389_v41 = vpop.f32.mrf.mxu2 }
 0x1b4   :  { %v390_v42 = vadd.f32 %v808_v36, %v389_v41 }
 0x1b6   :  { %v426_v45 = vmax.f32 %v390_v42, 0.0 }
 0x1bb   :  { %v391_v43 = vpop.f32.mrf.mxu2 }
 0x1bc   :  { %v392_v44 = vadd.f32 %v808_v36, %v391_v43 }
 0x1be   :  { %v427_v46 = vmax.f32 %v392_v44, 0.0 }
 0x1c0   :  { %v441_v47 = vpack.c.bf16 %v427_v46, %v426_v45 }
 0x1c2   :  { %529 = vmatmul.bf16.gmra.mxu3 %v441_v47 }
 0x1c3   :  { %v394_v48 = vpop.f32.mrf.mxu2 }
 0x1c4   :  { %v395_v49 = vadd.f32 %v808_v36, %v394_v48 }
 0x1c6   :  { %v428_v52 = vmax.f32 %v395_v49, 0.0 }
 0x1cb   :  { %v396_v50 = vpop.f32.mrf.mxu2 }
 0x1cc   :  { %v397_v51 = vadd.f32 %v808_v36, %v396_v50 }
 0x1ce   :  { %v429_v53 = vmax.f32 %v397_v51, 0.0 }
 0x1d0   :  { %v442_v54 = vpack.c.bf16 %v429_v53, %v428_v52 }
 0x1d2   :  { %534 = vmatmul.bf16.gmra.mxu3 %v442_v54 }
 0x1d3   :  { %v399_v55 = vpop.f32.mrf.mxu2 }
 0x1d4   :  { %v400_v56 = vadd.f32 %v808_v36, %v399_v55 }
 0x1d6   :  { %v430_v59 = vmax.f32 %v400_v56, 0.0 }
 0x1db   :  { %v401_v57 = vpop.f32.mrf.mxu2 }
 0x1dc   :  { %v402_v58 = vadd.f32 %v808_v36, %v401_v57 }
 0x1de   :  { %v431_v60 = vmax.f32 %v402_v58, 0.0 }
 0x1e0   :  { %v443_v61 = vpack.c.bf16 %v431_v60, %v430_v59 }
 0x1e2   :  { %539 = vmatmul.bf16.gmra.mxu3 %v443_v61 }
 0x1e3   :  { %v404_v62 = vpop.f32.mrf.mxu2 }
 0x1e4   :  { %v405_v63 = vadd.f32 %v808_v36, %v404_v62 }
 0x1e6   :  { %v432_v2 = vmax.f32 %v405_v63, 0.0 }
 0x1eb   :  { %v406_v0 = vpop.f32.mrf.mxu2 }
 0x1ec   :  { %v407_v1 = vadd.f32 %v808_v36, %v406_v0 }
 0x1ee   :  { %v433_v3 = vmax.f32 %v407_v1, 0.0 }
 0x1f0   :  { %v444_v4 = vpack.c.bf16 %v433_v3, %v432_v2 }
 0x1f2   :  { %544 = vmatmul.bf16.gmra.mxu3 %v444_v4 }
 0x1f3   :  { %v409_v5 = vpop.f32.mrf.mxu2 }
 0x1f4   :  { %v410_v6 = vadd.f32 %v808_v36, %v409_v5 }
 0x1f6   :  { %v434_v9 = vmax.f32 %v410_v6, 0.0 }
 0x1fb   :  { %v411_v7 = vpop.f32.mrf.mxu2 }
 0x1fc   :  { %v412_v8 = vadd.f32 %v808_v36, %v411_v7 }
 0x1fe   :  { %v435_v10 = vmax.f32 %v412_v8, 0.0 }
 0x200   :  { %v445_v11 = vpack.c.bf16 %v435_v10, %v434_v9 }
 0x202   :  { %549 = vmatmul.bf16.gmra.mxu3 %v445_v11 }
 0x203   :  { %v414_v12 = vpop.f32.mrf.mxu2 }
 0x204   :  { %v415_v13 = vadd.f32 %v808_v36, %v414_v12 }
 0x206   :  { %v436_v16 = vmax.f32 %v415_v13, 0.0 }
 0x20b   :  { %v416_v14 = vpop.f32.mrf.mxu2 }
 0x20c   :  { %v417_v15 = vadd.f32 %v808_v36, %v416_v14 }
 0x20e   :  { %v437_v17 = vmax.f32 %v417_v15, 0.0 }
 0x210   :  { %v446_v18 = vpack.c.bf16 %v437_v17, %v436_v16  ;;  %v16_v16 = vstv %s1179_s10 }
 0x211   :  { %17 = vst [vmem:[#allocation2] sm:$0x1] %v16_v16 }
 0x212   :  { %554 = vmatmul.bf16.gmra.mxu3 %v446_v18 }
 0x213   :  { %v419_v19 = vpop.f32.mrf.mxu2 }
 0x214   :  { %v420_v20 = vadd.f32 %v808_v36, %v419_v19 }
 0x216   :  { %v438_v23 = vmax.f32 %v420_v20, 0.0 }
 0x21b   :  { %v421_v21 = vpop.f32.mrf.mxu2 }
 0x21c   :  { %v422_v22 = vadd.f32 %v808_v36, %v421_v21 }
 0x21e   :  { %v439_v24 = vmax.f32 %v422_v22, 0.0 }
 0x220   :  { %v447_v25 = vpack.c.bf16 %v439_v24, %v438_v23 }
 0x222   :  { %559 = vmatmul.bf16.gmra.mxu3 %v447_v25 }
 0x235   :  { %v525_v27 = vpop.f32.mrf.mxu3 }
 0x236   :  { %v526_v28 = vadd.f32 %v1047_v26, %v525_v27 }
 0x238   :  { %v565_v30 = vmax.f32 %v526_v28, 0.0 }
 0x23a   :  { %v585_v31 = vmul.f32 %v1053_v29, %v565_v30 }
 0x23c   :  { %v601_v33 = vsel %vm209_vm2, %v585_v31, 0.0 }
 0x23d   :  { %v527_v35 = vpop.f32.mrf.mxu3  ;;  %602 = vadd.xlane.f32.xlu0 %v601_v33 }
 0x23e   :  { %v528_v36 = vadd.f32 %v1047_v26, %v527_v35 }
 0x240   :  { %v566_v37 = vmax.f32 %v528_v36, 0.0 }
 0x242   :  { %v586_v38 = vmul.f32 %v1053_v29, %v566_v37 }
 0x244   :  { %v604_v39 = vsel %vm209_vm2, %v586_v38, 0.0 }
 0x245   :  { %v530_v40 = vpop.f32.mrf.mxu3  ;;  %605 = vadd.xlane.f32.xlu0 %v604_v39 }
 0x246   :  { %v531_v34 = vadd.f32 %v1047_v26, %v530_v40 }
 0x248   :  { %v567_v32 = vmax.f32 %v531_v34, 0.0 }
 0x24a   :  { %v587_v41 = vmul.f32 %v1053_v29, %v567_v32 }
 0x24c   :  { %v607_v42 = vsel %vm209_vm2, %v587_v41, 0.0 }
 0x24d   :  { %v532_v43 = vpop.f32.mrf.mxu3  ;;  %608 = vadd.xlane.f32.xlu1 %v607_v42 }
 0x24e   :  { %v533_v44 = vadd.f32 %v1047_v26, %v532_v43  ;;  %v811_v43 = vld [vmem:[#allocation2] ss:$0 sm:$0xff] }
 0x250   :  { %v568_v45 = vmax.f32 %v533_v44, 0.0 }
 0x252   :  { %v588_v46 = vmul.f32 %v1053_v29, %v568_v45 }
 0x254   :  { %v610_v47 = vsel %vm209_vm2, %v588_v46, 0.0 }
 0x255   :  { %v535_v48 = vpop.f32.mrf.mxu3  ;;  %611 = vadd.xlane.f32.xlu1 %v610_v47 }
 0x256   :  { %v536_v49 = vadd.f32 %v1047_v26, %v535_v48 }
 0x258   :  { %v569_v50 = vmax.f32 %v536_v49, 0.0 }
 0x25a   :  { %v589_v51 = vmul.f32 %v1053_v29, %v569_v50 }
 0x25c   :  { %v613_v52 = vsel %vm209_vm2, %v589_v51, 0.0 }
 0x25d   :  { %v537_v53 = vpop.f32.mrf.mxu3  ;;  %614 = vadd.xlane.f32.xlu2 %v613_v52 }
 0x25e   :  { %v538_v54 = vadd.f32 %v1047_v26, %v537_v53 }
 0x260   :  { %v570_v55 = vmax.f32 %v538_v54, 0.0 }
 0x262   :  { %v590_v56 = vmul.f32 %v1053_v29, %v570_v55 }
 0x264   :  { %v616_v57 = vsel %vm209_vm2, %v590_v56, 0.0 }
 0x265   :  { %v540_v58 = vpop.f32.mrf.mxu3  ;;  %617 = vadd.xlane.f32.xlu2 %v616_v57 }
 0x266   :  { %v541_v59 = vadd.f32 %v1047_v26, %v540_v58 }
 0x268   :  { %v571_v60 = vmax.f32 %v541_v59, 0.0 }
 0x26a   :  { %v591_v61 = vmul.f32 %v1053_v29, %v571_v60 }
 0x26c   :  { %v619_v62 = vsel %vm209_vm2, %v591_v61, 0.0 }
 0x26d   :  { %v542_v63 = vpop.f32.mrf.mxu3  ;;  %620 = vadd.xlane.f32.xlu0 %v619_v62 }
 0x26e   :  { %v543_v0 = vadd.f32 %v1047_v26, %v542_v63 }
 0x270   :  { %v572_v1 = vmax.f32 %v543_v0, 0.0 }
 0x272   :  { %v592_v2 = vmul.f32 %v1053_v29, %v572_v1 }
 0x274   :  { %v622_v3 = vsel %vm209_vm2, %v592_v2, 0.0 }
 0x275   :  { %v545_v4 = vpop.f32.mrf.mxu3  ;;  %623 = vadd.xlane.f32.xlu1 %v622_v3 }
 0x276   :  { %v546_v5 = vadd.f32 %v1047_v26, %v545_v4 }
 0x278   :  { %v573_v6 = vmax.f32 %v546_v5, 0.0 }
 0x27a   :  { %v593_v7 = vmul.f32 %v1053_v29, %v573_v6 }
 0x27c   :  { %v625_v8 = vsel %vm209_vm2, %v593_v7, 0.0 }
 0x27d   :  { %v547_v9 = vpop.f32.mrf.mxu3  ;;  %626 = vadd.xlane.f32.xlu2 %v625_v8 }
 0x27e   :  { %v548_v10 = vadd.f32 %v1047_v26, %v547_v9 }
 0x280   :  { %v574_v11 = vmax.f32 %v548_v10, 0.0 }
 0x282   :  { %v594_v12 = vmul.f32 %v1053_v29, %v574_v11 }
 0x284   :  { %v628_v13 = vsel %vm209_vm2, %v594_v12, 0.0 }
 0x285   :  { %v550_v14 = vpop.f32.mrf.mxu3  ;;  %629 = vadd.xlane.f32.xlu0 %v628_v13 }
 0x286   :  { %v551_v15 = vadd.f32 %v1047_v26, %v550_v14 }
 0x288   :  { %v575_v17 = vmax.f32 %v551_v15, 0.0 }
 0x28a   :  { %v595_v18 = vmul.f32 %v1053_v29, %v575_v17 }
 0x28c   :  { %v631_v19 = vsel %vm209_vm2, %v595_v18, 0.0 }
 0x28d   :  { %v552_v20 = vpop.f32.mrf.mxu3  ;;  %632 = vadd.xlane.f32.xlu1 %v631_v19 }
 0x28e   :  { %v553_v21 = vadd.f32 %v1047_v26, %v552_v20 }
 0x290   :  { %v576_v22 = vmax.f32 %v553_v21, 0.0 }
 0x292   :  { %v596_v23 = vmul.f32 %v1053_v29, %v576_v22 }
 0x294   :  { %v634_v24 = vsel %vm209_vm2, %v596_v23, 0.0 }
 0x295   :  { %v555_v25 = vpop.f32.mrf.mxu3  ;;  %635 = vadd.xlane.f32.xlu2 %v634_v24 }
 0x296   :  { %v556_v27 = vadd.f32 %v1047_v26, %v555_v25 }
 0x298   :  { %v577_v28 = vmax.f32 %v556_v27, 0.0 }
 0x29a   :  { %v597_v30 = vmul.f32 %v1053_v29, %v577_v28 }
 0x29c   :  { %v637_v31 = vsel %vm209_vm2, %v597_v30, 0.0 }
 0x29d   :  { %v557_v33 = vpop.f32.mrf.mxu3  ;;  %638 = vadd.xlane.f32.xlu0 %v637_v31 }
 0x29e   :  { %v558_v35 = vadd.f32 %v1047_v26, %v557_v33 }
 0x2a0   :  { %v578_v36 = vmax.f32 %v558_v35, 0.0 }
 0x2a2   :  { %v598_v37 = vmul.f32 %v1053_v29, %v578_v36 }
 0x2a4   :  { %v640_v38 = vsel %vm209_vm2, %v598_v37, 0.0 }
 0x2a5   :  { %v560_v39 = vpop.f32.mrf.mxu3  ;;  %641 = vadd.xlane.f32.xlu1 %v640_v38 }
 0x2a6   :  { %v561_v40 = vadd.f32 %v1047_v26, %v560_v39 }
 0x2a8   :  { %v579_v34 = vmax.f32 %v561_v40, 0.0 }
 0x2aa   :  { %v599_v32 = vmul.f32 %v1053_v29, %v579_v34 }
 0x2ac   :  { %v643_v41 = vsel %vm209_vm2, %v599_v32, 0.0 }
 0x2ad   :  { %v562_v42 = vpop.f32.mrf.mxu3  ;;  %644 = vadd.xlane.f32.xlu2 %v643_v41 }
 0x2ae   :  { %v563_v44 = vadd.f32 %v1047_v26, %v562_v42 }
 0x2b0   :  { %v580_v45 = vmax.f32 %v563_v44, 0.0  ;;  %v603_v46 = vpop.xlane.xlu0 %602 }
 0x2b1   :  { %v653_v47 = vadd.f32 %v811_v43, %v603_v46 }
 0x2b2   :  { %v600_v48 = vmul.f32 %v1053_v29, %v580_v45 }
 0x2b3   :  { %670 = vst.msk [vmem:[%s1180_s11] sm:$0xff] %vm669_vm3, %v653_v47 }
 0x2b4   :  { %v646_v49 = vsel %vm209_vm2, %v600_v48, 0.0 }
 0x2b5   :  { %647 = vadd.xlane.f32.xlu0 %v646_v49 }
 0x2b8   :  { %v606_v50 = vpop.xlane.xlu0 %605 }
 0x2b9   :  { %v654_v51 = vadd.f32 %v811_v43, %v606_v50 }
 0x2bb   :  { %671 = vst.msk [vmem:[%s1180_s11 + $0x8] sm:$0xff] %vm669_vm3, %v654_v51 }
 0x2c0   :  { %v609_v26 = vpop.xlane.xlu1 %608 }
 0x2c1   :  { %v655_v52 = vadd.f32 %v811_v43, %v609_v26 }
 0x2c3   :  { %672 = vst.msk [vmem:[%s1180_s11 + $0x10] sm:$0xff] %vm669_vm3, %v655_v52 }
 0x2c8   :  { %v612_v29 = vpop.xlane.xlu1 %611 }
 0x2c9   :  { %v656_v53 = vadd.f32 %v811_v43, %v612_v29 }
 0x2cb   :  { %673 = vst.msk [vmem:[%s1180_s11 + $0x18] sm:$0xff] %vm669_vm3, %v656_v53 }
 0x2d0   :  { %v615_v54 = vpop.xlane.xlu2 %614 }
 0x2d1   :  { %v657_v55 = vadd.f32 %v811_v43, %v615_v54 }
 0x2d3   :  { %674 = vst.msk [vmem:[%s1180_s11 + $0x20] sm:$0xff] %vm669_vm3, %v657_v55 }
 0x2d8   :  { %v618_v56 = vpop.xlane.xlu2 %617 }
 0x2d9   :  { %v658_v57 = vadd.f32 %v811_v43, %v618_v56 }
 0x2db   :  { %675 = vst.msk [vmem:[%s1180_s11 + $0x28] sm:$0xff] %vm669_vm3, %v658_v57 }
 0x2e0   :  { %v621_v58 = vpop.xlane.xlu0 %620 }
 0x2e1   :  { %v659_v59 = vadd.f32 %v811_v43, %v621_v58 }
 0x2e3   :  { %676 = vst.msk [vmem:[%s1180_s11 + $0x30] sm:$0xff] %vm669_vm3, %v659_v59 }
 0x2e8   :  { %v624_v60 = vpop.xlane.xlu1 %623 }
 0x2e9   :  { %v660_v61 = vadd.f32 %v811_v43, %v624_v60 }
 0x2eb   :  { %677 = vst.msk [vmem:[%s1180_s11 + $0x38] sm:$0xff] %vm669_vm3, %v660_v61 }
 0x2f0   :  { %v627_v62 = vpop.xlane.xlu2 %626 }
 0x2f1   :  { %v661_v63 = vadd.f32 %v811_v43, %v627_v62 }
 0x2f3   :  { %678 = vst.msk [vmem:[%s1180_s11 + $0x40] sm:$0xff] %vm669_vm3, %v661_v63 }
 0x2f8   :  { %v630_v0 = vpop.xlane.xlu0 %629 }
 0x2f9   :  { %v662_v1 = vadd.f32 %v811_v43, %v630_v0 }
 0x2fb   :  { %679 = vst.msk [vmem:[%s1180_s11 + $0x48] sm:$0xff] %vm669_vm3, %v662_v1 }
 0x300   :  { %v633_v2 = vpop.xlane.xlu1 %632 }
 0x301   :  { %v663_v3 = vadd.f32 %v811_v43, %v633_v2 }
 0x303   :  { %680 = vst.msk [vmem:[%s1180_s11 + $0x50] sm:$0xff] %vm669_vm3, %v663_v3 }
 0x308   :  { %v636_v4 = vpop.xlane.xlu2 %635 }
 0x309   :  { %v664_v5 = vadd.f32 %v811_v43, %v636_v4 }
 0x30b   :  { %681 = vst.msk [vmem:[%s1180_s11 + $0x58] sm:$0xff] %vm669_vm3, %v664_v5 }
 0x310   :  { %v639_v6 = vpop.xlane.xlu0 %638 }
 0x311   :  { %v665_v7 = vadd.f32 %v811_v43, %v639_v6 }
 0x313   :  { %682 = vst.msk [vmem:[%s1180_s11 + $0x60] sm:$0xff] %vm669_vm3, %v665_v7 }
 0x318   :  { %v642_v8 = vpop.xlane.xlu1 %641 }
 0x319   :  { %v666_v9 = vadd.f32 %v811_v43, %v642_v8 }
 0x31b   :  { %683 = vst.msk [vmem:[%s1180_s11 + $0x68] sm:$0xff] %vm669_vm3, %v666_v9 }
 0x320   :  { %v645_v10 = vpop.xlane.xlu2 %644 }
 0x321   :  { %v667_v11 = vadd.f32 %v811_v43, %v645_v10 }
 0x323   :  { %684 = vst.msk [vmem:[%s1180_s11 + $0x70] sm:$0xff] %vm669_vm3, %v667_v11 }
 0x328   :  { %v648_v12 = vpop.xlane.xlu0 %647 }
 0x329   :  { %v668_v13 = vadd.f32 %v811_v43, %v648_v12 }
 0x32b   :  { %685 = vst.msk [vmem:[%s1180_s11 + $0x78] sm:$0xff] %vm669_vm3, %v668_v13 }

// kernel: tpu_custom_call.1
= control target key start
LH: loop header
LB: loop body
LE: loop exit
PB: predicated region body
PF: predicated region fallthrough
CT: control target
= control target key end

     0   :  { %vm96_vm0 = vcmask 1043456   ;;  %vm71_vm1 = vcmask 64512   ;;  %vm209_vm2 = vcmask 523264   ;;  %vm669_vm3 = vcmask 7168   ;;  %s1169_s1 = inlined_call_operand.vmem [shape: f32[8,64], index: 1, kind: input, shape index: {}]   ;;  %s1170_s0 = inlined_call_operand.vmem [shape: f32[128,8], index: 0, kind: input, shape index: {}]   ;;  %s1171_s2 = inlined_call_operand.vmem [shape: f32[1,64], index: 2, kind: input, shape index: {}]   ;;  %s1172_s3 = inlined_call_operand.vmem [shape: bf16[64,128], index: 3, kind: input, shape index: {}]   ;;  %s1173_s4 = inlined_call_operand.vmem [shape: f32[1,128], index: 4, kind: input, shape index: {}]   ;;  %s1174_s5 = inlined_call_operand.vmem [shape: bf16[128,128], index: 5, kind: input, shape index: {}]   ;;  %s1175_s6 = inlined_call_operand.vmem [shape: f32[1,128], index: 6, kind: input, shape index: {}]   ;;  %s1176_s7 = inlined_call_operand.vmem [shape: bf16[128,64], index: 7, kind: input, shape index: {}]   ;;  %s1177_s8 = inlined_call_operand.vmem [shape: f32[1,64], index: 8, kind: input, shape index: {}]   ;;  %s1178_s9 = inlined_call_operand.vmem [shape: f32[1,64], index: 9, kind: input, shape index: {}]   ;;  %s1179_s10 = inlined_call_operand.<no memory space> [shape: f32[1,1], index: 10, kind: input, shape index: {}]   ;;  %s1180_s11 = inlined_call_operand.vmem [shape: f32[128,1], index: 11, kind: output, shape index: {}]  }
   0x1   :  { %v65_v0 = vld [vmem:[%s1169_s1] sm:$0xff]  ;;  %v42_v2 = vld [vmem:[%s1170_s0 + $0x8] sm:$0xff]  ;;  %v43_v6 = vld [vmem:[%s1170_s0 + $0x10] sm:$0xff] }
   0x2   :  { %v41_v1 = vld [vmem:[%s1170_s0] sm:$0xff]  ;;  %v66_v3 = vpack.c.bf16 %v65_v0, %v65_v0  ;;  %v44_v7 = vld [vmem:[%s1170_s0 + $0x18] sm:$0xff]  ;;  %v46_v10 = vld [vmem:[%s1170_s0 + $0x28] sm:$0xff] }
   0x3   :  { %v57_v5 = vpack.c.bf16 %v42_v2, %v41_v1  ;;  %v58_v8 = vpack.c.bf16 %v44_v7, %v43_v6  ;;  %v45_v9 = vld [vmem:[%s1170_s0 + $0x20] sm:$0xff]  ;;  %v47_v12 = vld [vmem:[%s1170_s0 + $0x30] sm:$0xff]  ;;  %v48_v13 = vld [vmem:[%s1170_s0 + $0x38] sm:$0xff] }
   0x4   :  { %v98_v4 = vsel %vm96_vm0, %v66_v3, 0  ;;  %v59_v11 = vpack.c.bf16 %v46_v10, %v45_v9  ;;  %v60_v14 = vpack.c.bf16 %v48_v13, %v47_v12  ;;  %v49_v15 = vld [vmem:[%s1170_s0 + $0x40] sm:$0xff]  ;;  %v50_v16 = vld [vmem:[%s1170_s0 + $0x48] sm:$0xff]  ;;  %v51_v18 = vld [vmem:[%s1170_s0 + $0x50] sm:$0xff] }
   0x5   :  { %107 = vmatpush.bf16.msra.mxu0 %v98_v4  ;;  %v61_v17 = vpack.c.bf16 %v50_v16, %v49_v15  ;;  %v52_v19 = vld [vmem:[%s1170_s0 + $0x58] sm:$0xff]  ;;  %v53_v21 = vld [vmem:[%s1170_s0 + $0x60] sm:$0xff]  ;;  %v54_v22 = vld [vmem:[%s1170_s0 + $0x68] sm:$0xff] }
   0x6   :  { %v62_v20 = vpack.c.bf16 %v52_v19, %v51_v18  ;;  %v789_v23 = vld [vmem:[%s1172_s3 + $0x18] sm:$0xff]  ;;  %v63_v24 = vpack.c.bf16 %v54_v22, %v53_v21  ;;  %v788_v25 = vld [vmem:[%s1172_s3 + $0x10] sm:$0xff]  ;;  %v787_v26 = vld [vmem:[%s1172_s3 + $0x8] sm:$0xff] }
   0x7   :  { %238 = vmatpush.bf16.msra.mxu1 %v789_v23  ;;  %v786_v27 = vld [vmem:[%s1172_s3] sm:$0xff]  ;;  %v55_v28 = vld [vmem:[%s1170_s0 + $0x70] sm:$0xff]  ;;  %v56_v29 = vld [vmem:[%s1170_s0 + $0x78] sm:$0xff] }
   0x8   :  { %690 = vmatmul.msk.bf16.vlgmr.msra.gmra.mxu0 %vm71_vm1, %v57_v5  ;;  %v64_v30 = vpack.c.bf16 %v56_v29, %v55_v28  ;;  %v946_v32 = vld [vmem:[%s1171_s2] ss:$0 sm:$0xff]  ;;  %v797_v7 = vld [vmem:[%s1174_s5 + $0x38] sm:$0xff]  ;;  %v795_v13 = vld [vmem:[%s1174_s5 + $0x28] sm:$0xff] }
   0x9   :  { %375 = vmatpush.bf16.msra.mxu2 %v797_v7  ;;  %v793_v18 = vld [vmem:[%s1174_s5 + $0x18] sm:$0xff]  ;;  %v792_v22 = vld [vmem:[%s1174_s5 + $0x10] sm:$0xff] }
   0xb   :  { %239 = vmatpush.bf16.msra.mxu1 %v788_v25  ;;  %v790_v25 = vld [vmem:[%s1174_s5] sm:$0xff] }
   0xf   :  { %240 = vmatpush.bf16.msra.mxu1 %v787_v26 }
  0x13   :  { %241 = vmatpush.bf16.msra.mxu1 %v786_v27 }
  0x18   :  { %691 = vmatmul.msk.bf16.gmra.mxu0 %vm71_vm1, %v58_v8 }
  0x28   :  { %692 = vmatmul.msk.bf16.gmra.mxu0 %vm71_vm1, %v59_v11  ;;  %v796_v11 = vld [vmem:[%s1174_s5 + $0x30] sm:$0xff] }
  0x29   :  { %376 = vmatpush.bf16.msra.mxu2 %v796_v11  ;;  %v805_v11 = vld [vmem:[%s1176_s7 + $0x38] sm:$0xff] }
  0x2a   :  { %516 = vmatpush.bf16.msra.mxu3 %v805_v11 }
  0x2d   :  { %377 = vmatpush.bf16.msra.mxu2 %v795_v13  ;;  %v804_v13 = vld [vmem:[%s1176_s7 + $0x30] sm:$0xff] }
  0x2e   :  { %517 = vmatpush.bf16.msra.mxu3 %v804_v13 }
  0x38   :  { %693 = vmatmul.msk.bf16.gmra.mxu0 %vm71_vm1, %v60_v14  ;;  %v794_v14 = vld [vmem:[%s1174_s5 + $0x20] sm:$0xff] }
  0x39   :  { %378 = vmatpush.bf16.msra.mxu2 %v794_v14  ;;  %v803_v14 = vld [vmem:[%s1176_s7 + $0x28] sm:$0xff] }
  0x3a   :  { %518 = vmatpush.bf16.msra.mxu3 %v803_v14 }
  0x3d   :  { %379 = vmatpush.bf16.msra.mxu2 %v793_v18  ;;  %v802_v18 = vld [vmem:[%s1176_s7 + $0x20] sm:$0xff] }
  0x3e   :  { %519 = vmatpush.bf16.msra.mxu3 %v802_v18 }
  0x41   :  { %380 = vmatpush.bf16.msra.mxu2 %v792_v22 }
  0x48   :  { %694 = vmatmul.msk.bf16.gmra.mxu0 %vm71_vm1, %v61_v17 }
  0x58   :  { %695 = vmatmul.msk.bf16.gmra.mxu0 %vm71_vm1, %v62_v20 }
  0x68   :  { %696 = vmatmul.msk.bf16.gmra.mxu0 %vm71_vm1, %v63_v24  ;;  %v791_v24 = vld [vmem:[%s1174_s5 + $0x8] sm:$0xff] }
  0x69   :  { %381 = vmatpush.bf16.msra.mxu2 %v791_v24  ;;  %v800_v24 = vld [vmem:[%s1176_s7 + $0x10] sm:$0xff] }
  0x6d   :  { %382 = vmatpush.bf16.msra.mxu2 %v790_v25 }
  0x78   :  { %697 = vmatmul.msk.bf16.gmra.mxu0 %vm71_vm1, %v64_v30 }
  0x85   :  { %v109_v31 = vpop.f32.mrf.mxu0 }
  0x86   :  { %v110_v33 = vadd.f32 %v946_v32, %v109_v31 }
  0x88   :  { %v149_v36 = vmax.f32 %v110_v33, 0.0 }
  0x8d   :  { %v111_v34 = vpop.f32.mrf.mxu0 }
  0x8e   :  { %v112_v35 = vadd.f32 %v946_v32, %v111_v34  ;;  %v999_v34 = vld [vmem:[%s1173_s4] ss:$0 sm:$0xff] }
  0x90   :  { %v150_v37 = vmax.f32 %v112_v35, 0.0 }
  0x92   :  { %v165_v38 = vpack.c.bf16 %v150_v37, %v149_v36 }
  0x94   :  { %714 = vmatmul.msk.bf16.vlgmr.msra.gmra.mxu1 %vm209_vm2, %v165_v38 }
  0x95   :  { %v114_v39 = vpop.f32.mrf.mxu0 }
  0x96   :  { %v115_v40 = vadd.f32 %v946_v32, %v114_v39 }
  0x98   :  { %v151_v43 = vmax.f32 %v115_v40, 0.0 }
  0x9d   :  { %v116_v41 = vpop.f32.mrf.mxu0 }
  0x9e   :  { %v117_v42 = vadd.f32 %v946_v32, %v116_v41 }
  0xa0   :  { %v152_v44 = vmax.f32 %v117_v42, 0.0 }
  0xa2   :  { %v166_v45 = vpack.c.bf16 %v152_v44, %v151_v43 }
  0xa4   :  { %715 = vmatmul.msk.bf16.gmra.mxu1 %vm209_vm2, %v166_v45 }
  0xa5   :  { %v119_v46 = vpop.f32.mrf.mxu0 }
  0xa6   :  { %v120_v47 = vadd.f32 %v946_v32, %v119_v46 }
  0xa8   :  { %v153_v50 = vmax.f32 %v120_v47, 0.0 }
  0xad   :  { %v121_v48 = vpop.f32.mrf.mxu0 }
  0xae   :  { %v122_v49 = vadd.f32 %v946_v32, %v121_v48 }
  0xb0   :  { %v154_v51 = vmax.f32 %v122_v49, 0.0 }
  0xb2   :  { %v167_v52 = vpack.c.bf16 %v154_v51, %v153_v50 }
  0xb4   :  { %716 = vmatmul.msk.bf16.gmra.mxu1 %vm209_vm2, %v167_v52 }
  0xb5   :  { %v124_v53 = vpop.f32.mrf.mxu0 }
  0xb6   :  { %v125_v54 = vadd.f32 %v946_v32, %v124_v53 }
  0xb8   :  { %v155_v57 = vmax.f32 %v125_v54, 0.0 }
  0xbd   :  { %v126_v55 = vpop.f32.mrf.mxu0 }
  0xbe   :  { %v127_v56 = vadd.f32 %v946_v32, %v126_v55 }
  0xc0   :  { %v156_v58 = vmax.f32 %v127_v56, 0.0 }
  0xc2   :  { %v168_v59 = vpack.c.bf16 %v156_v58, %v155_v57 }
  0xc4   :  { %717 = vmatmul.msk.bf16.gmra.mxu1 %vm209_vm2, %v168_v59 }
  0xc5   :  { %v129_v60 = vpop.f32.mrf.mxu0 }
  0xc6   :  { %v130_v61 = vadd.f32 %v946_v32, %v129_v60 }
  0xc8   :  { %v157_v0 = vmax.f32 %v130_v61, 0.0 }
  0xcd   :  { %v131_v62 = vpop.f32.mrf.mxu0 }
  0xce   :  { %v132_v63 = vadd.f32 %v946_v32, %v131_v62 }
  0xd0   :  { %v158_v1 = vmax.f32 %v132_v63, 0.0 }
  0xd2   :  { %v169_v2 = vpack.c.bf16 %v158_v1, %v157_v0 }
  0xd4   :  { %718 = vmatmul.msk.bf16.gmra.mxu1 %vm209_vm2, %v169_v2 }
  0xd5   :  { %v134_v3 = vpop.f32.mrf.mxu0 }
  0xd6   :  { %v135_v4 = vadd.f32 %v946_v32, %v134_v3 }
  0xd8   :  { %v159_v8 = vmax.f32 %v135_v4, 0.0 }
  0xdd   :  { %v136_v5 = vpop.f32.mrf.mxu0 }
  0xde   :  { %v137_v6 = vadd.f32 %v946_v32, %v136_v5 }
  0xe0   :  { %v160_v9 = vmax.f32 %v137_v6, 0.0 }
  0xe2   :  { %v170_v10 = vpack.c.bf16 %v160_v9, %v159_v8 }
  0xe4   :  { %719 = vmatmul.msk.bf16.gmra.mxu1 %vm209_vm2, %v170_v10 }
  0xe5   :  { %v139_v12 = vpop.f32.mrf.mxu0 }
  0xe6   :  { %v140_v15 = vadd.f32 %v946_v32, %v139_v12 }
  0xe8   :  { %v161_v19 = vmax.f32 %v140_v15, 0.0 }
  0xed   :  { %v141_v16 = vpop.f32.mrf.mxu0 }
  0xee   :  { %v142_v17 = vadd.f32 %v946_v32, %v141_v16 }
  0xf0   :  { %v162_v20 = vmax.f32 %v142_v17, 0.0 }
  0xf2   :  { %v171_v21 = vpack.c.bf16 %v162_v20, %v161_v19 }
  0xf4   :  { %720 = vmatmul.msk.bf16.gmra.mxu1 %vm209_vm2, %v171_v21 }
  0xf5   :  { %v144_v23 = vpop.f32.mrf.mxu0 }
  0xf6   :  { %v145_v26 = vadd.f32 %v946_v32, %v144_v23  ;;  %v801_v23 = vld [vmem:[%s1176_s7 + $0x18] sm:$0xff] }
  0xf7   :  { %520 = vmatpush.bf16.msra.mxu3 %v801_v23 }
  0xf8   :  { %v163_v29 = vmax.f32 %v145_v26, 0.0 }
  0xfb   :  { %521 = vmatpush.bf16.msra.mxu3 %v800_v24 }
  0xfd   :  { %v146_v27 = vpop.f32.mrf.mxu0 }
  0xfe   :  { %v147_v28 = vadd.f32 %v946_v32, %v146_v27  ;;  %v799_v27 = vld [vmem:[%s1176_s7 + $0x8] sm:$0xff] }
  0xff   :  { %522 = vmatpush.bf16.msra.mxu3 %v799_v27 }
 0x100   :  { %v164_v30 = vmax.f32 %v147_v28, 0.0 }
 0x102   :  { %v172_v31 = vpack.c.bf16 %v164_v30, %v163_v29 }
 0x104   :  { %721 = vmatmul.msk.bf16.gmra.mxu1 %vm209_vm2, %v172_v31  ;;  %v798_v31 = vld [vmem:[%s1176_s7] sm:$0xff] }
 0x105   :  { %523 = vmatpush.bf16.msra.mxu3 %v798_v31 }
 0x111   :  { %v243_v33 = vpop.f32.mrf.mxu1 }
 0x112   :  { %v244_v35 = vadd.f32 %v999_v34, %v243_v33 }
 0x114   :  { %v283_v38 = vmax.f32 %v244_v35, 0.0 }
 0x119   :  { %v245_v36 = vpop.f32.mrf.mxu1 }
 0x11a   :  { %v246_v37 = vadd.f32 %v999_v34, %v245_v36  ;;  %v808_v36 = vld [vmem:[%s1175_s6] ss:$0 sm:$0xff] }
 0x11c   :  { %v284_v39 = vmax.f32 %v246_v37, 0.0 }
 0x11e   :  { %v299_v40 = vpack.c.bf16 %v284_v39, %v283_v38 }
 0x120   :  { %383 = vmatmul.bf16.vlgmr.msra.gmra.mxu2 %v299_v40 }
 0x121   :  { %v248_v32 = vpop.f32.mrf.mxu1 }
 0x122   :  { %v249_v41 = vadd.f32 %v999_v34, %v248_v32 }
 0x124   :  { %v285_v44 = vmax.f32 %v249_v41, 0.0 }
 0x129   :  { %v250_v42 = vpop.f32.mrf.mxu1 }
 0x12a   :  { %v251_v43 = vadd.f32 %v999_v34, %v250_v42 }
 0x12c   :  { %v286_v45 = vmax.f32 %v251_v43, 0.0 }
 0x12e   :  { %v300_v46 = vpack.c.bf16 %v286_v45, %v285_v44 }
 0x130   :  { %388 = vmatmul.bf16.gmra.mxu2 %v300_v46 }
 0x131   :  { %v253_v47 = vpop.f32.mrf.mxu1 }
 0x132   :  { %v254_v48 = vadd.f32 %v999_v34, %v253_v47 }
 0x134   :  { %v287_v51 = vmax.f32 %v254_v48, 0.0 }
 0x139   :  { %v255_v49 = vpop.f32.mrf.mxu1 }
 0x13a   :  { %v256_v50 = vadd.f32 %v999_v34, %v255_v49 }
 0x13c   :  { %v288_v52 = vmax.f32 %v256_v50, 0.0 }
 0x13e   :  { %v301_v53 = vpack.c.bf16 %v288_v52, %v287_v51 }
 0x140   :  { %393 = vmatmul.bf16.gmra.mxu2 %v301_v53 }
 0x141   :  { %v258_v54 = vpop.f32.mrf.mxu1 }
 0x142   :  { %v259_v55 = vadd.f32 %v999_v34, %v258_v54 }
 0x144   :  { %v289_v58 = vmax.f32 %v259_v55, 0.0 }
 0x149   :  { %v260_v56 = vpop.f32.mrf.mxu1 }
 0x14a   :  { %v261_v57 = vadd.f32 %v999_v34, %v260_v56 }
 0x14c   :  { %v290_v59 = vmax.f32 %v261_v57, 0.0 }
 0x14e   :  { %v302_v60 = vpack.c.bf16 %v290_v59, %v289_v58 }
 0x150   :  { %398 = vmatmul.bf16.gmra.mxu2 %v302_v60 }
 0x151   :  { %v263_v61 = vpop.f32.mrf.mxu1 }
 0x152   :  { %v264_v62 = vadd.f32 %v999_v34, %v263_v61 }
 0x154   :  { %v291_v1 = vmax.f32 %v264_v62, 0.0 }
 0x159   :  { %v265_v63 = vpop.f32.mrf.mxu1 }
 0x15a   :  { %v266_v0 = vadd.f32 %v999_v34, %v265_v63 }
 0x15c   :  { %v292_v2 = vmax.f32 %v266_v0, 0.0 }
 0x15e   :  { %v303_v3 = vpack.c.bf16 %v292_v2, %v291_v1 }
 0x160   :  { %403 = vmatmul.bf16.gmra.mxu2 %v303_v3 }
 0x161   :  { %v268_v4 = vpop.f32.mrf.mxu1 }
 0x162   :  { %v269_v5 = vadd.f32 %v999_v34, %v268_v4 }
 0x164   :  { %v293_v8 = vmax.f32 %v269_v5, 0.0 }
 0x169   :  { %v270_v6 = vpop.f32.mrf.mxu1 }
 0x16a   :  { %v271_v7 = vadd.f32 %v999_v34, %v270_v6 }
 0x16c   :  { %v294_v9 = vmax.f32 %v271_v7, 0.0 }
 0x16e   :  { %v304_v10 = vpack.c.bf16 %v294_v9, %v293_v8 }
 0x170   :  { %408 = vmatmul.bf16.gmra.mxu2 %v304_v10 }
 0x171   :  { %v273_v12 = vpop.f32.mrf.mxu1 }
 0x172   :  { %v274_v15 = vadd.f32 %v999_v34, %v273_v12 }
 0x174   :  { %v295_v19 = vmax.f32 %v274_v15, 0.0 }
 0x179   :  { %v275_v16 = vpop.f32.mrf.mxu1 }
 0x17a   :  { %v276_v17 = vadd.f32 %v999_v34, %v275_v16 }
 0x17c   :  { %v296_v20 = vmax.f32 %v276_v17, 0.0 }
 0x17e   :  { %v305_v21 = vpack.c.bf16 %v296_v20, %v295_v19 }
 0x180   :  { %413 = vmatmul.bf16.gmra.mxu2 %v305_v21 }
 0x181   :  { %v278_v22 = vpop.f32.mrf.mxu1 }
 0x182   :  { %v279_v25 = vadd.f32 %v999_v34, %v278_v22 }
 0x184   :  { %v297_v29 = vmax.f32 %v279_v25, 0.0 }
 0x189   :  { %v280_v26 = vpop.f32.mrf.mxu1 }
 0x18a   :  { %v281_v28 = vadd.f32 %v999_v34, %v280_v26  ;;  %v1047_v26 = vld [vmem:[%s1177_s8] ss:$0 sm:$0xff] }
 0x18c   :  { %v298_v30 = vmax.f32 %v281_v28, 0.0 }
 0x18e   :  { %v306_v33 = vpack.c.bf16 %v298_v30, %v297_v29  ;;  %v1053_v29 = vld [vmem:[%s1178_s9] ss:$0 sm:$0xff] }
 0x190   :  { %418 = vmatmul.bf16.gmra.mxu2 %v306_v33 }
 0x1a3   :  { %v384_v35 = vpop.f32.mrf.mxu2 }
 0x1a4   :  { %v385_v37 = vadd.f32 %v808_v36, %v384_v35 }
 0x1a6   :  { %v424_v40 = vmax.f32 %v385_v37, 0.0 }
 0x1ab   :  { %v386_v38 = vpop.f32.mrf.mxu2 }
 0x1ac   :  { %v387_v39 = vadd.f32 %v808_v36, %v386_v38 }
 0x1ae   :  { %v425_v34 = vmax.f32 %v387_v39, 0.0 }
 0x1b0   :  { %v440_v32 = vpack.c.bf16 %v425_v34, %v424_v40 }
 0x1b2   :  { %524 = vmatmul.bf16.vlgmr.msra.gmra.mxu3 %v440_v32 }
 0x1b3   :  { %v389_v41 = vpop.f32.mrf.mxu2 }
 0x1b4   :  { %v390_v42 = vadd.f32 %v808_v36, %v389_v41 }
 0x1b6   :  { %v426_v45 = vmax.f32 %v390_v42, 0.0 }
 0x1bb   :  { %v391_v43 = vpop.f32.mrf.mxu2 }
 0x1bc   :  { %v392_v44 = vadd.f32 %v808_v36, %v391_v43 }
 0x1be   :  { %v427_v46 = vmax.f32 %v392_v44, 0.0 }
 0x1c0   :  { %v441_v47 = vpack.c.bf16 %v427_v46, %v426_v45 }
 0x1c2   :  { %529 = vmatmul.bf16.gmra.mxu3 %v441_v47 }
 0x1c3   :  { %v394_v48 = vpop.f32.mrf.mxu2 }
 0x1c4   :  { %v395_v49 = vadd.f32 %v808_v36, %v394_v48 }
 0x1c6   :  { %v428_v52 = vmax.f32 %v395_v49, 0.0 }
 0x1cb   :  { %v396_v50 = vpop.f32.mrf.mxu2 }
 0x1cc   :  { %v397_v51 = vadd.f32 %v808_v36, %v396_v50 }
 0x1ce   :  { %v429_v53 = vmax.f32 %v397_v51, 0.0 }
 0x1d0   :  { %v442_v54 = vpack.c.bf16 %v429_v53, %v428_v52 }
 0x1d2   :  { %534 = vmatmul.bf16.gmra.mxu3 %v442_v54 }
 0x1d3   :  { %v399_v55 = vpop.f32.mrf.mxu2 }
 0x1d4   :  { %v400_v56 = vadd.f32 %v808_v36, %v399_v55 }
 0x1d6   :  { %v430_v59 = vmax.f32 %v400_v56, 0.0 }
 0x1db   :  { %v401_v57 = vpop.f32.mrf.mxu2 }
 0x1dc   :  { %v402_v58 = vadd.f32 %v808_v36, %v401_v57 }
 0x1de   :  { %v431_v60 = vmax.f32 %v402_v58, 0.0 }
 0x1e0   :  { %v443_v61 = vpack.c.bf16 %v431_v60, %v430_v59 }
 0x1e2   :  { %539 = vmatmul.bf16.gmra.mxu3 %v443_v61 }
 0x1e3   :  { %v404_v62 = vpop.f32.mrf.mxu2 }
 0x1e4   :  { %v405_v63 = vadd.f32 %v808_v36, %v404_v62 }
 0x1e6   :  { %v432_v2 = vmax.f32 %v405_v63, 0.0 }
 0x1eb   :  { %v406_v0 = vpop.f32.mrf.mxu2 }
 0x1ec   :  { %v407_v1 = vadd.f32 %v808_v36, %v406_v0 }
 0x1ee   :  { %v433_v3 = vmax.f32 %v407_v1, 0.0 }
 0x1f0   :  { %v444_v4 = vpack.c.bf16 %v433_v3, %v432_v2 }
 0x1f2   :  { %544 = vmatmul.bf16.gmra.mxu3 %v444_v4 }
 0x1f3   :  { %v409_v5 = vpop.f32.mrf.mxu2 }
 0x1f4   :  { %v410_v6 = vadd.f32 %v808_v36, %v409_v5 }
 0x1f6   :  { %v434_v9 = vmax.f32 %v410_v6, 0.0 }
 0x1fb   :  { %v411_v7 = vpop.f32.mrf.mxu2 }
 0x1fc   :  { %v412_v8 = vadd.f32 %v808_v36, %v411_v7 }
 0x1fe   :  { %v435_v10 = vmax.f32 %v412_v8, 0.0 }
 0x200   :  { %v445_v11 = vpack.c.bf16 %v435_v10, %v434_v9 }
 0x202   :  { %549 = vmatmul.bf16.gmra.mxu3 %v445_v11 }
 0x203   :  { %v414_v12 = vpop.f32.mrf.mxu2 }
 0x204   :  { %v415_v13 = vadd.f32 %v808_v36, %v414_v12 }
 0x206   :  { %v436_v16 = vmax.f32 %v415_v13, 0.0 }
 0x20b   :  { %v416_v14 = vpop.f32.mrf.mxu2 }
 0x20c   :  { %v417_v15 = vadd.f32 %v808_v36, %v416_v14 }
 0x20e   :  { %v437_v17 = vmax.f32 %v417_v15, 0.0 }
 0x210   :  { %v446_v18 = vpack.c.bf16 %v437_v17, %v436_v16  ;;  %v16_v16 = vstv %s1179_s10 }
 0x211   :  { %17 = vst [vmem:[#allocation2] sm:$0x1] %v16_v16 }
 0x212   :  { %554 = vmatmul.bf16.gmra.mxu3 %v446_v18 }
 0x213   :  { %v419_v19 = vpop.f32.mrf.mxu2 }
 0x214   :  { %v420_v20 = vadd.f32 %v808_v36, %v419_v19 }
 0x216   :  { %v438_v23 = vmax.f32 %v420_v20, 0.0 }
 0x21b   :  { %v421_v21 = vpop.f32.mrf.mxu2 }
 0x21c   :  { %v422_v22 = vadd.f32 %v808_v36, %v421_v21 }
 0x21e   :  { %v439_v24 = vmax.f32 %v422_v22, 0.0 }
 0x220   :  { %v447_v25 = vpack.c.bf16 %v439_v24, %v438_v23 }
 0x222   :  { %559 = vmatmul.bf16.gmra.mxu3 %v447_v25 }
 0x235   :  { %v525_v27 = vpop.f32.mrf.mxu3 }
 0x236   :  { %v526_v28 = vadd.f32 %v1047_v26, %v525_v27 }
 0x238   :  { %v565_v30 = vmax.f32 %v526_v28, 0.0 }
 0x23a   :  { %v585_v31 = vmul.f32 %v1053_v29, %v565_v30 }
 0x23c   :  { %v601_v33 = vsel %vm209_vm2, %v585_v31, 0.0 }
 0x23d   :  { %v527_v35 = vpop.f32.mrf.mxu3  ;;  %602 = vadd.xlane.f32.xlu0 %v601_v33 }
 0x23e   :  { %v528_v36 = vadd.f32 %v1047_v26, %v527_v35 }
 0x240   :  { %v566_v37 = vmax.f32 %v528_v36, 0.0 }
 0x242   :  { %v586_v38 = vmul.f32 %v1053_v29, %v566_v37 }
 0x244   :  { %v604_v39 = vsel %vm209_vm2, %v586_v38, 0.0 }
 0x245   :  { %v530_v40 = vpop.f32.mrf.mxu3  ;;  %605 = vadd.xlane.f32.xlu0 %v604_v39 }
 0x246   :  { %v531_v34 = vadd.f32 %v1047_v26, %v530_v40 }
 0x248   :  { %v567_v32 = vmax.f32 %v531_v34, 0.0 }
 0x24a   :  { %v587_v41 = vmul.f32 %v1053_v29, %v567_v32 }
 0x24c   :  { %v607_v42 = vsel %vm209_vm2, %v587_v41, 0.0 }
 0x24d   :  { %v532_v43 = vpop.f32.mrf.mxu3  ;;  %608 = vadd.xlane.f32.xlu1 %v607_v42 }
 0x24e   :  { %v533_v44 = vadd.f32 %v1047_v26, %v532_v43  ;;  %v811_v43 = vld [vmem:[#allocation2] ss:$0 sm:$0xff] }
 0x250   :  { %v568_v45 = vmax.f32 %v533_v44, 0.0 }
 0x252   :  { %v588_v46 = vmul.f32 %v1053_v29, %v568_v45 }
 0x254   :  { %v610_v47 = vsel %vm209_vm2, %v588_v46, 0.0 }
 0x255   :  { %v535_v48 = vpop.f32.mrf.mxu3  ;;  %611 = vadd.xlane.f32.xlu1 %v610_v47 }
 0x256   :  { %v536_v49 = vadd.f32 %v1047_v26, %v535_v48 }
 0x258   :  { %v569_v50 = vmax.f32 %v536_v49, 0.0 }
 0x25a   :  { %v589_v51 = vmul.f32 %v1053_v29, %v569_v50 }
 0x25c   :  { %v613_v52 = vsel %vm209_vm2, %v589_v51, 0.0 }
 0x25d   :  { %v537_v53 = vpop.f32.mrf.mxu3  ;;  %614 = vadd.xlane.f32.xlu2 %v613_v52 }
 0x25e   :  { %v538_v54 = vadd.f32 %v1047_v26, %v537_v53 }
 0x260   :  { %v570_v55 = vmax.f32 %v538_v54, 0.0 }
 0x262   :  { %v590_v56 = vmul.f32 %v1053_v29, %v570_v55 }
 0x264   :  { %v616_v57 = vsel %vm209_vm2, %v590_v56, 0.0 }
 0x265   :  { %v540_v58 = vpop.f32.mrf.mxu3  ;;  %617 = vadd.xlane.f32.xlu2 %v616_v57 }
 0x266   :  { %v541_v59 = vadd.f32 %v1047_v26, %v540_v58 }
 0x268   :  { %v571_v60 = vmax.f32 %v541_v59, 0.0 }
 0x26a   :  { %v591_v61 = vmul.f32 %v1053_v29, %v571_v60 }
 0x26c   :  { %v619_v62 = vsel %vm209_vm2, %v591_v61, 0.0 }
 0x26d   :  { %v542_v63 = vpop.f32.mrf.mxu3  ;;  %620 = vadd.xlane.f32.xlu0 %v619_v62 }
 0x26e   :  { %v543_v0 = vadd.f32 %v1047_v26, %v542_v63 }
 0x270   :  { %v572_v1 = vmax.f32 %v543_v0, 0.0 }
 0x272   :  { %v592_v2 = vmul.f32 %v1053_v29, %v572_v1 }
 0x274   :  { %v622_v3 = vsel %vm209_vm2, %v592_v2, 0.0 }
 0x275   :  { %v545_v4 = vpop.f32.mrf.mxu3  ;;  %623 = vadd.xlane.f32.xlu1 %v622_v3 }
 0x276   :  { %v546_v5 = vadd.f32 %v1047_v26, %v545_v4 }
 0x278   :  { %v573_v6 = vmax.f32 %v546_v5, 0.0 }
 0x27a   :  { %v593_v7 = vmul.f32 %v1053_v29, %v573_v6 }
 0x27c   :  { %v625_v8 = vsel %vm209_vm2, %v593_v7, 0.0 }
 0x27d   :  { %v547_v9 = vpop.f32.mrf.mxu3  ;;  %626 = vadd.xlane.f32.xlu2 %v625_v8 }
 0x27e   :  { %v548_v10 = vadd.f32 %v1047_v26, %v547_v9 }
 0x280   :  { %v574_v11 = vmax.f32 %v548_v10, 0.0 }
 0x282   :  { %v594_v12 = vmul.f32 %v1053_v29, %v574_v11 }
 0x284   :  { %v628_v13 = vsel %vm209_vm2, %v594_v12, 0.0 }
 0x285   :  { %v550_v14 = vpop.f32.mrf.mxu3  ;;  %629 = vadd.xlane.f32.xlu0 %v628_v13 }
 0x286   :  { %v551_v15 = vadd.f32 %v1047_v26, %v550_v14 }
 0x288   :  { %v575_v17 = vmax.f32 %v551_v15, 0.0 }
 0x28a   :  { %v595_v18 = vmul.f32 %v1053_v29, %v575_v17 }
 0x28c   :  { %v631_v19 = vsel %vm209_vm2, %v595_v18, 0.0 }
 0x28d   :  { %v552_v20 = vpop.f32.mrf.mxu3  ;;  %632 = vadd.xlane.f32.xlu1 %v631_v19 }
 0x28e   :  { %v553_v21 = vadd.f32 %v1047_v26, %v552_v20 }
 0x290   :  { %v576_v22 = vmax.f32 %v553_v21, 0.0 }
 0x292   :  { %v596_v23 = vmul.f32 %v1053_v29, %v576_v22 }
 0x294   :  { %v634_v24 = vsel %vm209_vm2, %v596_v23, 0.0 }
 0x295   :  { %v555_v25 = vpop.f32.mrf.mxu3  ;;  %635 = vadd.xlane.f32.xlu2 %v634_v24 }
 0x296   :  { %v556_v27 = vadd.f32 %v1047_v26, %v555_v25 }
 0x298   :  { %v577_v28 = vmax.f32 %v556_v27, 0.0 }
 0x29a   :  { %v597_v30 = vmul.f32 %v1053_v29, %v577_v28 }
 0x29c   :  { %v637_v31 = vsel %vm209_vm2, %v597_v30, 0.0 }
 0x29d   :  { %v557_v33 = vpop.f32.mrf.mxu3  ;;  %638 = vadd.xlane.f32.xlu0 %v637_v31 }
 0x29e   :  { %v558_v35 = vadd.f32 %v1047_v26, %v557_v33 }
 0x2a0   :  { %v578_v36 = vmax.f32 %v558_v35, 0.0 }
 0x2a2   :  { %v598_v37 = vmul.f32 %v1053_v29, %v578_v36 }
 0x2a4   :  { %v640_v38 = vsel %vm209_vm2, %v598_v37, 0.0 }
 0x2a5   :  { %v560_v39 = vpop.f32.mrf.mxu3  ;;  %641 = vadd.xlane.f32.xlu1 %v640_v38 }
 0x2a6   :  { %v561_v40 = vadd.f32 %v1047_v26, %v560_v39 }
 0x2a8   :  { %v579_v34 = vmax.f32 %v561_v40, 0.0 }
 0x2aa   :  { %v599_v32 = vmul.f32 %v1053_v29, %v579_v34 }
 0x2ac   :  { %v643_v41 = vsel %vm209_vm2, %v599_v32, 0.0 }
 0x2ad   :  { %v562_v42 = vpop.f32.mrf.mxu3  ;;  %644 = vadd.xlane.f32.xlu2 %v643_v41 }
 0x2ae   :  { %v563_v44 = vadd.f32 %v1047_v26, %v562_v42 }
 0x2b0   :  { %v580_v45 = vmax.f32 %v563_v44, 0.0  ;;  %v603_v46 = vpop.xlane.xlu0 %602 }
 0x2b1   :  { %v653_v47 = vadd.f32 %v811_v43, %v603_v46 }
 0x2b2   :  { %v600_v48 = vmul.f32 %v1053_v29, %v580_v45 }
 0x2b3   :  { %670 = vst.msk [vmem:[%s1180_s11] sm:$0xff] %vm669_vm3, %v653_v47 }
 0x2b4   :  { %v646_v49 = vsel %vm209_vm2, %v600_v48, 0.0 }
 0x2b5   :  { %647 = vadd.xlane.f32.xlu0 %v646_v49 }
 0x2b8   :  { %v606_v50 = vpop.xlane.xlu0 %605 }
 0x2b9   :  { %v654_v51 = vadd.f32 %v811_v43, %v606_v50 }
 0x2bb   :  { %671 = vst.msk [vmem:[%s1180_s11 + $0x8] sm:$0xff] %vm669_vm3, %v654_v51 }
 0x2c0   :  { %v609_v26 = vpop.xlane.xlu1 %608 }
 0x2c1   :  { %v655_v52 = vadd.f32 %v811_v43, %v609_v26 }
 0x2c3   :  { %672 = vst.msk [vmem:[%s1180_s11 + $0x10] sm:$0xff] %vm669_vm3, %v655_v52 }
 0x2c8   :  { %v612_v29 = vpop.xlane.xlu1 %611 }
 0x2c9   :  { %v656_v53 = vadd.f32 %v811_v43, %v612_v29 }
 0x2cb   :  { %673 = vst.msk [vmem:[%s1180_s11 + $0x18] sm:$0xff] %vm669_vm3, %v656_v53 }
 0x2d0   :  { %v615_v54 = vpop.xlane.xlu2 %614 }
 0x2d1   :  { %v657_v55 = vadd.f32 %v811_v43, %v615_v54 }
 0x2d3   :  { %674 = vst.msk [vmem:[%s1180_s11 + $0x20] sm:$0xff] %vm669_vm3, %v657_v55 }
 0x2d8   :  { %v618_v56 = vpop.xlane.xlu2 %617 }
 0x2d9   :  { %v658_v57 = vadd.f32 %v811_v43, %v618_v56 }
 0x2db   :  { %675 = vst.msk [vmem:[%s1180_s11 + $0x28] sm:$0xff] %vm669_vm3, %v658_v57 }
 0x2e0   :  { %v621_v58 = vpop.xlane.xlu0 %620 }
 0x2e1   :  { %v659_v59 = vadd.f32 %v811_v43, %v621_v58 }
 0x2e3   :  { %676 = vst.msk [vmem:[%s1180_s11 + $0x30] sm:$0xff] %vm669_vm3, %v659_v59 }
 0x2e8   :  { %v624_v60 = vpop.xlane.xlu1 %623 }
 0x2e9   :  { %v660_v61 = vadd.f32 %v811_v43, %v624_v60 }
 0x2eb   :  { %677 = vst.msk [vmem:[%s1180_s11 + $0x38] sm:$0xff] %vm669_vm3, %v660_v61 }
 0x2f0   :  { %v627_v62 = vpop.xlane.xlu2 %626 }
 0x2f1   :  { %v661_v63 = vadd.f32 %v811_v43, %v627_v62 }
 0x2f3   :  { %678 = vst.msk [vmem:[%s1180_s11 + $0x40] sm:$0xff] %vm669_vm3, %v661_v63 }
 0x2f8   :  { %v630_v0 = vpop.xlane.xlu0 %629 }
 0x2f9   :  { %v662_v1 = vadd.f32 %v811_v43, %v630_v0 }
 0x2fb   :  { %679 = vst.msk [vmem:[%s1180_s11 + $0x48] sm:$0xff] %vm669_vm3, %v662_v1 }
 0x300   :  { %v633_v2 = vpop.xlane.xlu1 %632 }
 0x301   :  { %v663_v3 = vadd.f32 %v811_v43, %v633_v2 }
 0x303   :  { %680 = vst.msk [vmem:[%s1180_s11 + $0x50] sm:$0xff] %vm669_vm3, %v663_v3 }
 0x308   :  { %v636_v4 = vpop.xlane.xlu2 %635 }
 0x309   :  { %v664_v5 = vadd.f32 %v811_v43, %v636_v4 }
 0x30b   :  { %681 = vst.msk [vmem:[%s1180_s11 + $0x58] sm:$0xff] %vm669_vm3, %v664_v5 }
 0x310   :  { %v639_v6 = vpop.xlane.xlu0 %638 }
 0x311   :  { %v665_v7 = vadd.f32 %v811_v43, %v639_v6 }
 0x313   :  { %682 = vst.msk [vmem:[%s1180_s11 + $0x60] sm:$0xff] %vm669_vm3, %v665_v7 }
 0x318   :  { %v642_v8 = vpop.xlane.xlu1 %641 }
 0x319   :  { %v666_v9 = vadd.f32 %v811_v43, %v642_v8 }
 0x31b   :  { %683 = vst.msk [vmem:[%s1180_s11 + $0x68] sm:$0xff] %vm669_vm3, %v666_v9 }
 0x320   :  { %v645_v10 = vpop.xlane.xlu2 %644 }
 0x321   :  { %v667_v11 = vadd.f32 %v811_v43, %v645_v10 }
 0x323   :  { %684 = vst.msk [vmem:[%s1180_s11 + $0x70] sm:$0xff] %vm669_vm3, %v667_v11 }
 0x328   :  { %v648_v12 = vpop.xlane.xlu0 %647 }
 0x329   :  { %v668_v13 = vadd.f32 %v811_v43, %v648_v12 }
 0x32b   :  { %685 = vst.msk [vmem:[%s1180_s11 + $0x78] sm:$0xff] %vm669_vm3, %v668_v13 }

</bundles_post_ra>
